<compile_context>
chip_gen: v6e
topology: v6e:2x2x1
jax: 0.10.0
libtpu: 0.0.40
codegen_flags: <defaults>
</compile_context>

<pallas_src>
import functools

import jax
import jax.numpy as jnp
from jax import lax
from jax.experimental import pallas as pl
from jax.experimental.pallas import tpu as pltpu


def _gradient_loss_kernel(p_ref, t_ref, m_ref, out_ref, acc_ref, *, scales):
    bt, H, W = p_ref.shape

    # Fresh accumulator for this grid step (scratch persists across steps).
    acc_ref[...] = jnp.zeros_like(acc_ref)

    # Batch-independent (H, W) masks, built once per grid step and reused for
    # every image of the block (captured by the fori_loop body).
    row = lax.broadcasted_iota(jnp.int32, (H, W), 0)
    col = lax.broadcasted_iota(jnp.int32, (H, W), 1)
    grid_masks, pair_x_masks, pair_y_masks = [], [], []
    for s in range(scales):
        step = 1 << s
        on_grid = ((row & (step - 1)) == 0) & ((col & (step - 1)) == 0)
        grid_masks.append(jnp.where(on_grid, 1.0, 0.0).astype(jnp.float32))
        # col >= step (resp. row >= step) also kills the roll wrap-around.
        pair_x_masks.append(
            jnp.where(on_grid & (col >= step), 1.0, 0.0).astype(jnp.float32))
        pair_y_masks.append(
            jnp.where(on_grid & (row >= step), 1.0, 0.0).astype(jnp.float32))

    # (8, 128) output slab indices: row 0 = nums, row 1 = dens, lane s = scale s.
    slab_r = lax.broadcasted_iota(jnp.int32, acc_ref.shape, 0)
    slab_c = lax.broadcasted_iota(jnp.int32, acc_ref.shape, 1)

    def image_body(i, carry):
        # Cast to f32 on-chip; inputs arrive in their native dtype.
        p = p_ref[i].astype(jnp.float32)          # (H, W)
        t = t_ref[i].astype(jnp.float32)
        m = m_ref[i].astype(jnp.float32)
        diff = m * (p - t)

        slab = jnp.zeros(acc_ref.shape, jnp.float32)
        for s in range(scales):
            step = 1 << s
            num_s = jnp.float32(0.0)

            # x-direction pairs (r, c-step) -> (r, c), both on the stride-step
            # sub-grid (left endpoint is automatically on-grid when c is).
            if step < W:
                d_l = pltpu.roll(diff, step, axis=1)      # diff[r, c - step]
                m_l = pltpu.roll(m, step, axis=1)
                gx = jnp.abs(diff - d_l) * (m * m_l) * pair_x_masks[s]
                num_s = num_s + jnp.sum(gx)

            # y-direction pairs (r-step, c) -> (r, c).
            if step < H:
                d_u = pltpu.roll(diff, step, axis=0)      # diff[r - step, c]
                m_u = pltpu.roll(m, step, axis=0)
                gy = jnp.abs(diff - d_u) * (m * m_u) * pair_y_masks[s]
                num_s = num_s + jnp.sum(gy)

            den_s = jnp.sum(m) if step == 1 else jnp.sum(m * grid_masks[s])

            slab = slab + jnp.where((slab_r == 0) & (slab_c == s), num_s, 0.0)
            slab = slab + jnp.where((slab_r == 1) & (slab_c == s), den_s, 0.0)

        acc_ref[...] += slab
        return carry

    lax.fori_loop(0, bt, image_body, 0)
    out_ref[0, :, :] = acc_ref[...]


def _vmem_limit_bytes():
    """Generation-aware scoped-VMEM limit: ~3/4 of physical, capped at 96 MiB
    (=> ~48 MiB on v7x (64 MiB physical), 96 MiB on v5e/v6e (128 MiB))."""
    try:
        physical = int(pltpu.get_tpu_info().vmem_capacity_bytes)
    except Exception:
        physical = 64 * 1024 * 1024          # conservative (v7x-sized) fallback
    return int(min(physical * 3 // 4, 96 * 1024 * 1024))


def _pick_batch_tile(B, H, W, itemsize, vmem_limit, scales):
    """Largest divisor of B whose block (3 inputs x 2 pipeline buffers, plus the
    f32 temporaries and per-scale masks) fits inside the scoped-VMEM budget,
    while keeping at least two grid blocks when B >= 2 (v7x megacore)."""
    usable = (vmem_limit * 3) // 4                       # headroom for Mosaic
    fixed = (6 + 3 * scales) * H * W * 4                 # f32 temps + (H,W) masks
    per_image = 3 * 2 * H * W * itemsize                 # 3 inputs x 2 buffers
    max_bt = max(1, (usable - fixed) // max(1, per_image))
    if B >= 2:
        max_bt = min(max_bt, B // 2)                     # >= 2 parallel steps
    bt = 1
    for d in range(1, B + 1):
        if B % d == 0 and d <= max_bt:
            bt = d
    return bt


@functools.partial(jax.jit, static_argnames=("scales",))
def gradient_loss_multiscale(prediction, target, mask, scales=4):
    """JAX/Pallas equivalent of GradientLoss(scales, reduction='batch-based')."""
    assert prediction.ndim == 3
    assert prediction.shape == target.shape == mask.shape
    assert 1 <= scales <= 128
    B, H, W = prediction.shape

    # Inputs go in at their native dtype; the f32 up-cast happens on-chip.
    itemsize = max(jnp.dtype(prediction.dtype).itemsize,
                   jnp.dtype(target.dtype).itemsize,
                   jnp.dtype(mask.dtype).itemsize)
    vmem_limit = _vmem_limit_bytes()
    bt = _pick_batch_tile(B, H, W, itemsize, vmem_limit, scales)
    num_blocks = B // bt

    img_spec = pl.BlockSpec((bt, H, W), lambda g: (g, 0, 0))
    out_spec = pl.BlockSpec((1, 8, 128), lambda g: (g, 0, 0))

    partials = pl.pallas_call(
        functools.partial(_gradient_loss_kernel, scales=scales),
        out_shape=jax.ShapeDtypeStruct((num_blocks, 8, 128), jnp.float32),
        grid_spec=pltpu.PrefetchScalarGridSpec(
            num_scalar_prefetch=0,
            grid=(num_blocks,),
            in_specs=[img_spec, img_spec, img_spec],
            out_specs=out_spec,
            scratch_shapes=[pltpu.VMEM((8, 128), jnp.float32)],
        ),
        compiler_params=pltpu.CompilerParams(
            dimension_semantics=("parallel",),
            vmem_limit_bytes=vmem_limit,
        ),
    )(prediction, target, mask)

    slab = jnp.sum(partials, axis=0)          # (8, 128)
    nums = slab[0, :scales]
    dens = slab[1, :scales]
    safe = jnp.where(dens == 0, jnp.float32(1.0), dens)
    per_scale = jnp.where(dens == 0, jnp.float32(0.0), nums / safe)
    return jnp.sum(per_scale)


def _reference_jnp(prediction, target, mask, scales=4):
    # Pure-jnp reference mirroring the PyTorch module (batch-based reduction).
    prediction = prediction.astype(jnp.float32)
    target = target.astype(jnp.float32)
    mask = mask.astype(jnp.float32)
    total = jnp.float32(0.0)
    for scale in range(scales):
        step = 2 ** scale
        p = prediction[:, ::step, ::step]
        t = target[:, ::step, ::step]
        m = mask[:, ::step, ::step]
        M = jnp.sum(m, axis=(1, 2))
        diff = m * (p - t)
        gx = jnp.abs(diff[:, :, 1:] - diff[:, :, :-1]) * (m[:, :, 1:] * m[:, :, :-1])
        gy = jnp.abs(diff[:, 1:, :] - diff[:, :-1, :]) * (m[:, 1:, :] * m[:, :-1, :])
        image_loss = jnp.sum(gx, axis=(1, 2)) + jnp.sum(gy, axis=(1, 2))
        div = jnp.sum(M)
        total = total + jnp.where(div == 0, 0.0, jnp.sum(image_loss) / div)
    return total


if __name__ == "__main__":
    key = jax.random.PRNGKey(0)
    kp, kt, km = jax.random.split(key, 3)

    B, H, W = 4, 32, 128
    prediction = jax.random.normal(kp, (B, H, W), dtype=jnp.float32)
    target = jax.random.normal(kt, (B, H, W), dtype=jnp.float32)
    mask = (jax.random.uniform(km, (B, H, W)) > 0.3).astype(jnp.float32)

    out = gradient_loss_multiscale(prediction, target, mask, scales=4)
    out = jax.block_until_ready(out)

    ref = _reference_jnp(prediction, target, mask, scales=4)
    assert jnp.allclose(out, ref, rtol=1e-4, atol=1e-4), (out, ref)

    # Native-dtype path (no wrapper up-cast): bf16 inputs, cast happens in-kernel.
    out_bf16 = gradient_loss_multiscale(
        prediction.astype(jnp.bfloat16),
        target.astype(jnp.bfloat16),
        mask.astype(jnp.bfloat16),
        scales=4,
    )
    out_bf16 = jax.block_until_ready(out_bf16)
    assert bool(jnp.isfinite(out_bf16)), out_bf16

    print("KERNEL_OK")
</pallas_src>

<mosaic_0001>
module attributes {stable_mosaic.version = 11 : i64} {
  func.func @_gradient_loss_kernel(%arg0: i32, %arg1: memref<2x32x128xf32, #tpu.memory_space<vmem>>, %arg2: memref<2x32x128xf32, #tpu.memory_space<vmem>>, %arg3: memref<2x32x128xf32, #tpu.memory_space<vmem>>, %arg4: memref<1x8x128xf32, #tpu.memory_space<vmem>>, %arg5: memref<8x128xf32, #tpu.memory_space<vmem>>) attributes {dimension_semantics = [#tpu.dimension_semantics<parallel>], iteration_bounds = array<i64: 2>, scalar_prefetch = 0 : i64, scratch_operands = 1 : i64, tpu.core_type = #tpu.core_type<tc>, window_params = [{transform_indices = @transform_0, window_bounds = array<i64: 2, 32, 128>}, {transform_indices = @transform_1, window_bounds = array<i64: 2, 32, 128>}, {transform_indices = @transform_2, window_bounds = array<i64: 2, 32, 128>}, {transform_indices = @transform_3, window_bounds = array<i64: 1, 8, 128>}]} {
    %cst = arith.constant 0.000000e+00 : f32
    %0 = vector.broadcast %cst : f32 to vector<8x128xf32>
    %c0 = arith.constant 0 : index
    %c0_0 = arith.constant 0 : index
    %1 = vector.load %arg5[%c0, %c0_0] : memref<8x128xf32, #tpu.memory_space<vmem>>, vector<8x128xf32>
    tpu.vector_store %arg5[%c0, %c0_0], %0 {strides = array<i32>} : memref<8x128xf32, #tpu.memory_space<vmem>>, vector<8x128xf32>,
    %2 = tpu.iota {dimensions = array<i32: 0>} : vector<32x128xi32>
    %3 = tpu.iota {dimensions = array<i32: 1>} : vector<32x128xi32>
    %c0_i32 = arith.constant 0 : i32
    %4 = vector.broadcast %c0_i32 : i32 to vector<32x128xi32>
    %5 = arith.andi %2, %4 : vector<32x128xi32>
    %c0_i32_1 = arith.constant 0 : i32
    %6 = vector.broadcast %c0_i32_1 : i32 to vector<32x128xi32>
    %7 = arith.cmpi eq, %5, %6 : vector<32x128xi32>
    %c0_i32_2 = arith.constant 0 : i32
    %8 = vector.broadcast %c0_i32_2 : i32 to vector<32x128xi32>
    %9 = arith.andi %3, %8 : vector<32x128xi32>
    %c0_i32_3 = arith.constant 0 : i32
    %10 = vector.broadcast %c0_i32_3 : i32 to vector<32x128xi32>
    %11 = arith.cmpi eq, %9, %10 : vector<32x128xi32>
    %12 = arith.andi %7, %11 : vector<32x128xi1>
    %c1_i32 = arith.constant 1 : i32
    %13 = vector.broadcast %c1_i32 : i32 to vector<32x128xi32>
    %14 = arith.cmpi sge, %3, %13 : vector<32x128xi32>
    %15 = arith.andi %12, %14 : vector<32x128xi1>
    %cst_4 = arith.constant 1.000000e+00 : f32
    %cst_5 = arith.constant 0.000000e+00 : f32
    %16 = vector.broadcast %cst_4 : f32 to vector<32x128xf32>
    %17 = vector.broadcast %cst_5 : f32 to vector<32x128xf32>
    %18 = arith.select %15, %16, %17 : vector<32x128xi1>, vector<32x128xf32>
    %c1_i32_6 = arith.constant 1 : i32
    %19 = vector.broadcast %c1_i32_6 : i32 to vector<32x128xi32>
    %20 = arith.cmpi sge, %2, %19 : vector<32x128xi32>
    %21 = arith.andi %12, %20 : vector<32x128xi1>
    %cst_7 = arith.constant 1.000000e+00 : f32
    %cst_8 = arith.constant 0.000000e+00 : f32
    %22 = vector.broadcast %cst_7 : f32 to vector<32x128xf32>
    %23 = vector.broadcast %cst_8 : f32 to vector<32x128xf32>
    %24 = arith.select %21, %22, %23 : vector<32x128xi1>, vector<32x128xf32>
    %c1_i32_9 = arith.constant 1 : i32
    %25 = vector.broadcast %c1_i32_9 : i32 to vector<32x128xi32>
    %26 = arith.andi %2, %25 : vector<32x128xi32>
    %c0_i32_10 = arith.constant 0 : i32
    %27 = vector.broadcast %c0_i32_10 : i32 to vector<32x128xi32>
    %28 = arith.cmpi eq, %26, %27 : vector<32x128xi32>
    %c1_i32_11 = arith.constant 1 : i32
    %29 = vector.broadcast %c1_i32_11 : i32 to vector<32x128xi32>
    %30 = arith.andi %3, %29 : vector<32x128xi32>
    %c0_i32_12 = arith.constant 0 : i32
    %31 = vector.broadcast %c0_i32_12 : i32 to vector<32x128xi32>
    %32 = arith.cmpi eq, %30, %31 : vector<32x128xi32>
    %33 = arith.andi %28, %32 : vector<32x128xi1>
    %cst_13 = arith.constant 1.000000e+00 : f32
    %cst_14 = arith.constant 0.000000e+00 : f32
    %34 = vector.broadcast %cst_13 : f32 to vector<32x128xf32>
    %35 = vector.broadcast %cst_14 : f32 to vector<32x128xf32>
    %36 = arith.select %33, %34, %35 : vector<32x128xi1>, vector<32x128xf32>
    %c2_i32 = arith.constant 2 : i32
    %37 = vector.broadcast %c2_i32 : i32 to vector<32x128xi32>
    %38 = arith.cmpi sge, %3, %37 : vector<32x128xi32>
    %39 = arith.andi %33, %38 : vector<32x128xi1>
    %cst_15 = arith.constant 1.000000e+00 : f32
    %cst_16 = arith.constant 0.000000e+00 : f32
    %40 = vector.broadcast %cst_15 : f32 to vector<32x128xf32>
    %41 = vector.broadcast %cst_16 : f32 to vector<32x128xf32>
    %42 = arith.select %39, %40, %41 : vector<32x128xi1>, vector<32x128xf32>
    %c2_i32_17 = arith.constant 2 : i32
    %43 = vector.broadcast %c2_i32_17 : i32 to vector<32x128xi32>
    %44 = arith.cmpi sge, %2, %43 : vector<32x128xi32>
    %45 = arith.andi %33, %44 : vector<32x128xi1>
    %cst_18 = arith.constant 1.000000e+00 : f32
    %cst_19 = arith.constant 0.000000e+00 : f32
    %46 = vector.broadcast %cst_18 : f32 to vector<32x128xf32>
    %47 = vector.broadcast %cst_19 : f32 to vector<32x128xf32>
    %48 = arith.select %45, %46, %47 : vector<32x128xi1>, vector<32x128xf32>
    %c3_i32 = arith.constant 3 : i32
    %49 = vector.broadcast %c3_i32 : i32 to vector<32x128xi32>
    %50 = arith.andi %2, %49 : vector<32x128xi32>
    %c0_i32_20 = arith.constant 0 : i32
    %51 = vector.broadcast %c0_i32_20 : i32 to vector<32x128xi32>
    %52 = arith.cmpi eq, %50, %51 : vector<32x128xi32>
    %c3_i32_21 = arith.constant 3 : i32
    %53 = vector.broadcast %c3_i32_21 : i32 to vector<32x128xi32>
    %54 = arith.andi %3, %53 : vector<32x128xi32>
    %c0_i32_22 = arith.constant 0 : i32
    %55 = vector.broadcast %c0_i32_22 : i32 to vector<32x128xi32>
    %56 = arith.cmpi eq, %54, %55 : vector<32x128xi32>
    %57 = arith.andi %52, %56 : vector<32x128xi1>
    %cst_23 = arith.constant 1.000000e+00 : f32
    %cst_24 = arith.constant 0.000000e+00 : f32
    %58 = vector.broadcast %cst_23 : f32 to vector<32x128xf32>
    %59 = vector.broadcast %cst_24 : f32 to vector<32x128xf32>
    %60 = arith.select %57, %58, %59 : vector<32x128xi1>, vector<32x128xf32>
    %c4_i32 = arith.constant 4 : i32
    %61 = vector.broadcast %c4_i32 : i32 to vector<32x128xi32>
    %62 = arith.cmpi sge, %3, %61 : vector<32x128xi32>
    %63 = arith.andi %57, %62 : vector<32x128xi1>
    %cst_25 = arith.constant 1.000000e+00 : f32
    %cst_26 = arith.constant 0.000000e+00 : f32
    %64 = vector.broadcast %cst_25 : f32 to vector<32x128xf32>
    %65 = vector.broadcast %cst_26 : f32 to vector<32x128xf32>
    %66 = arith.select %63, %64, %65 : vector<32x128xi1>, vector<32x128xf32>
    %c4_i32_27 = arith.constant 4 : i32
    %67 = vector.broadcast %c4_i32_27 : i32 to vector<32x128xi32>
    %68 = arith.cmpi sge, %2, %67 : vector<32x128xi32>
    %69 = arith.andi %57, %68 : vector<32x128xi1>
    %cst_28 = arith.constant 1.000000e+00 : f32
    %cst_29 = arith.constant 0.000000e+00 : f32
    %70 = vector.broadcast %cst_28 : f32 to vector<32x128xf32>
    %71 = vector.broadcast %cst_29 : f32 to vector<32x128xf32>
    %72 = arith.select %69, %70, %71 : vector<32x128xi1>, vector<32x128xf32>
    %c7_i32 = arith.constant 7 : i32
    %73 = vector.broadcast %c7_i32 : i32 to vector<32x128xi32>
    %74 = arith.andi %2, %73 : vector<32x128xi32>
    %c0_i32_30 = arith.constant 0 : i32
    %75 = vector.broadcast %c0_i32_30 : i32 to vector<32x128xi32>
    %76 = arith.cmpi eq, %74, %75 : vector<32x128xi32>
    %c7_i32_31 = arith.constant 7 : i32
    %77 = vector.broadcast %c7_i32_31 : i32 to vector<32x128xi32>
    %78 = arith.andi %3, %77 : vector<32x128xi32>
    %c0_i32_32 = arith.constant 0 : i32
    %79 = vector.broadcast %c0_i32_32 : i32 to vector<32x128xi32>
    %80 = arith.cmpi eq, %78, %79 : vector<32x128xi32>
    %81 = arith.andi %76, %80 : vector<32x128xi1>
    %cst_33 = arith.constant 1.000000e+00 : f32
    %cst_34 = arith.constant 0.000000e+00 : f32
    %82 = vector.broadcast %cst_33 : f32 to vector<32x128xf32>
    %83 = vector.broadcast %cst_34 : f32 to vector<32x128xf32>
    %84 = arith.select %81, %82, %83 : vector<32x128xi1>, vector<32x128xf32>
    %c8_i32 = arith.constant 8 : i32
    %85 = vector.broadcast %c8_i32 : i32 to vector<32x128xi32>
    %86 = arith.cmpi sge, %3, %85 : vector<32x128xi32>
    %87 = arith.andi %81, %86 : vector<32x128xi1>
    %cst_35 = arith.constant 1.000000e+00 : f32
    %cst_36 = arith.constant 0.000000e+00 : f32
    %88 = vector.broadcast %cst_35 : f32 to vector<32x128xf32>
    %89 = vector.broadcast %cst_36 : f32 to vector<32x128xf32>
    %90 = arith.select %87, %88, %89 : vector<32x128xi1>, vector<32x128xf32>
    %c8_i32_37 = arith.constant 8 : i32
    %91 = vector.broadcast %c8_i32_37 : i32 to vector<32x128xi32>
    %92 = arith.cmpi sge, %2, %91 : vector<32x128xi32>
    %93 = arith.andi %81, %92 : vector<32x128xi1>
    %cst_38 = arith.constant 1.000000e+00 : f32
    %cst_39 = arith.constant 0.000000e+00 : f32
    %94 = vector.broadcast %cst_38 : f32 to vector<32x128xf32>
    %95 = vector.broadcast %cst_39 : f32 to vector<32x128xf32>
    %96 = arith.select %93, %94, %95 : vector<32x128xi1>, vector<32x128xf32>
    %97 = tpu.iota {dimensions = array<i32: 0>} : vector<8x128xi32>
    %98 = tpu.iota {dimensions = array<i32: 1>} : vector<8x128xi32>
    %c0_i32_40 = arith.constant 0 : i32
    %c2_i32_41 = arith.constant 2 : i32
    %99 = arith.addi %c0_i32_40, %c2_i32_41 : i32
    %c1_i32_42 = arith.constant 1 : i32
    scf.for %arg6 = %c0_i32_40 to %99 step %c1_i32_42  : i32 {
      %104 = arith.index_cast %arg6 : i32 to index
      %c0_49 = arith.constant 0 : index
      %c0_50 = arith.constant 0 : index
      %105 = vector.load %arg1[%104, %c0_49, %c0_50] : memref<2x32x128xf32, #tpu.memory_space<vmem>>, vector<1x32x128xf32>
      %106 = vector.shape_cast %105 : vector<1x32x128xf32> to vector<32x128xf32>
      %107 = arith.index_cast %arg6 : i32 to index
      %c0_51 = arith.constant 0 : index
      %c0_52 = arith.constant 0 : index
      %108 = vector.load %arg2[%107, %c0_51, %c0_52] : memref<2x32x128xf32, #tpu.memory_space<vmem>>, vector<1x32x128xf32>
      %109 = vector.shape_cast %108 : vector<1x32x128xf32> to vector<32x128xf32>
      %110 = arith.index_cast %arg6 : i32 to index
      %c0_53 = arith.constant 0 : index
      %c0_54 = arith.constant 0 : index
      %111 = vector.load %arg3[%110, %c0_53, %c0_54] : memref<2x32x128xf32, #tpu.memory_space<vmem>>, vector<1x32x128xf32>
      %112 = vector.shape_cast %111 : vector<1x32x128xf32> to vector<32x128xf32>
      %113 = arith.subf %106, %109 : vector<32x128xf32>
      %114 = arith.mulf %112, %113 : vector<32x128xf32>
      %cst_55 = arith.constant 0.000000e+00 : f32
      %115 = vector.broadcast %cst_55 : f32 to vector<8x128xf32>
      %c1_i32_56 = arith.constant 1 : i32
      %116 = tpu.dynamic_rotate %114 by %c1_i32_56 dim 1 : vector<32x128xf32>, i32 -> vector<32x128xf32>
      %c1_i32_57 = arith.constant 1 : i32
      %117 = tpu.dynamic_rotate %112 by %c1_i32_57 dim 1 : vector<32x128xf32>, i32 -> vector<32x128xf32>
      %118 = arith.subf %114, %116 : vector<32x128xf32>
      %119 = math.absf %118 : vector<32x128xf32>
      %120 = arith.mulf %112, %117 : vector<32x128xf32>
      %121 = arith.mulf %119, %120 : vector<32x128xf32>
      %122 = arith.mulf %121, %18 : vector<32x128xf32>
      %123 = vector.shape_cast %122 : vector<32x128xf32> to vector<1x32x128xf32>
      %cst_58 = arith.constant dense<0.000000e+00> : vector<1xf32>
      %124 = vector.multi_reduction <add>, %123, %cst_58 [1, 2] : vector<1x32x128xf32> to vector<1xf32>
      %125 = vector.shape_cast %124 : vector<1xf32> to vector<1x1x1xf32>
      %126 = vector.extract %125[0, 0, 0] : f32 from vector<1x1x1xf32>
      %cst_59 = arith.constant 0.000000e+00 : f32
      %127 = arith.addf %cst_59, %126 : f32
      %c1_i32_60 = arith.constant 1 : i32
      %128 = tpu.dynamic_rotate %114 by %c1_i32_60 dim 0 : vector<32x128xf32>, i32 -> vector<32x128xf32>
      %c1_i32_61 = arith.constant 1 : i32
      %129 = tpu.dynamic_rotate %112 by %c1_i32_61 dim 0 : vector<32x128xf32>, i32 -> vector<32x128xf32>
      %130 = arith.subf %114, %128 : vector<32x128xf32>
      %131 = math.absf %130 : vector<32x128xf32>
      %132 = arith.mulf %112, %129 : vector<32x128xf32>
      %133 = arith.mulf %131, %132 : vector<32x128xf32>
      %134 = arith.mulf %133, %24 : vector<32x128xf32>
      %135 = vector.shape_cast %134 : vector<32x128xf32> to vector<1x32x128xf32>
      %cst_62 = arith.constant dense<0.000000e+00> : vector<1xf32>
      %136 = vector.multi_reduction <add>, %135, %cst_62 [1, 2] : vector<1x32x128xf32> to vector<1xf32>
      %137 = vector.shape_cast %136 : vector<1xf32> to vector<1x1x1xf32>
      %138 = vector.extract %137[0, 0, 0] : f32 from vector<1x1x1xf32>
      %139 = arith.addf %127, %138 : f32
      %140 = vector.shape_cast %112 : vector<32x128xf32> to vector<1x32x128xf32>
      %cst_63 = arith.constant dense<0.000000e+00> : vector<1xf32>
      %141 = vector.multi_reduction <add>, %140, %cst_63 [1, 2] : vector<1x32x128xf32> to vector<1xf32>
      %142 = vector.shape_cast %141 : vector<1xf32> to vector<1x1x1xf32>
      %143 = vector.extract %142[0, 0, 0] : f32 from vector<1x1x1xf32>
      %c0_i32_64 = arith.constant 0 : i32
      %144 = vector.broadcast %c0_i32_64 : i32 to vector<8x128xi32>
      %145 = arith.cmpi eq, %97, %144 : vector<8x128xi32>
      %c0_i32_65 = arith.constant 0 : i32
      %146 = vector.broadcast %c0_i32_65 : i32 to vector<8x128xi32>
      %147 = arith.cmpi eq, %98, %146 : vector<8x128xi32>
      %148 = arith.andi %145, %147 : vector<8x128xi1>
      %cst_66 = arith.constant 0.000000e+00 : f32
      %149 = vector.broadcast %139 : f32 to vector<8x128xf32>
      %150 = vector.broadcast %cst_66 : f32 to vector<8x128xf32>
      %151 = arith.select %148, %149, %150 : vector<8x128xi1>, vector<8x128xf32>
      %152 = arith.addf %115, %151 : vector<8x128xf32>
      %c1_i32_67 = arith.constant 1 : i32
      %153 = vector.broadcast %c1_i32_67 : i32 to vector<8x128xi32>
      %154 = arith.cmpi eq, %97, %153 : vector<8x128xi32>
      %c0_i32_68 = arith.constant 0 : i32
      %155 = vector.broadcast %c0_i32_68 : i32 to vector<8x128xi32>
      %156 = arith.cmpi eq, %98, %155 : vector<8x128xi32>
      %157 = arith.andi %154, %156 : vector<8x128xi1>
      %cst_69 = arith.constant 0.000000e+00 : f32
      %158 = vector.broadcast %143 : f32 to vector<8x128xf32>
      %159 = vector.broadcast %cst_69 : f32 to vector<8x128xf32>
      %160 = arith.select %157, %158, %159 : vector<8x128xi1>, vector<8x128xf32>
      %161 = arith.addf %152, %160 : vector<8x128xf32>
      %c2_i32_70 = arith.constant 2 : i32
      %162 = tpu.dynamic_rotate %114 by %c2_i32_70 dim 1 : vector<32x128xf32>, i32 -> vector<32x128xf32>
      %c2_i32_71 = arith.constant 2 : i32
      %163 = tpu.dynamic_rotate %112 by %c2_i32_71 dim 1 : vector<32x128xf32>, i32 -> vector<32x128xf32>
      %164 = arith.subf %114, %162 : vector<32x128xf32>
      %165 = math.absf %164 : vector<32x128xf32>
      %166 = arith.mulf %112, %163 : vector<32x128xf32>
      %167 = arith.mulf %165, %166 : vector<32x128xf32>
      %168 = arith.mulf %167, %42 : vector<32x128xf32>
      %169 = vector.shape_cast %168 : vector<32x128xf32> to vector<1x32x128xf32>
      %cst_72 = arith.constant dense<0.000000e+00> : vector<1xf32>
      %170 = vector.multi_reduction <add>, %169, %cst_72 [1, 2] : vector<1x32x128xf32> to vector<1xf32>
      %171 = vector.shape_cast %170 : vector<1xf32> to vector<1x1x1xf32>
      %172 = vector.extract %171[0, 0, 0] : f32 from vector<1x1x1xf32>
      %cst_73 = arith.constant 0.000000e+00 : f32
      %173 = arith.addf %cst_73, %172 : f32
      %c2_i32_74 = arith.constant 2 : i32
      %174 = tpu.dynamic_rotate %114 by %c2_i32_74 dim 0 : vector<32x128xf32>, i32 -> vector<32x128xf32>
      %c2_i32_75 = arith.constant 2 : i32
      %175 = tpu.dynamic_rotate %112 by %c2_i32_75 dim 0 : vector<32x128xf32>, i32 -> vector<32x128xf32>
      %176 = arith.subf %114, %174 : vector<32x128xf32>
      %177 = math.absf %176 : vector<32x128xf32>
      %178 = arith.mulf %112, %175 : vector<32x128xf32>
      %179 = arith.mulf %177, %178 : vector<32x128xf32>
      %180 = arith.mulf %179, %48 : vector<32x128xf32>
      %181 = vector.shape_cast %180 : vector<32x128xf32> to vector<1x32x128xf32>
      %cst_76 = arith.constant dense<0.000000e+00> : vector<1xf32>
      %182 = vector.multi_reduction <add>, %181, %cst_76 [1, 2] : vector<1x32x128xf32> to vector<1xf32>
      %183 = vector.shape_cast %182 : vector<1xf32> to vector<1x1x1xf32>
      %184 = vector.extract %183[0, 0, 0] : f32 from vector<1x1x1xf32>
      %185 = arith.addf %173, %184 : f32
      %186 = arith.mulf %112, %36 : vector<32x128xf32>
      %187 = vector.shape_cast %186 : vector<32x128xf32> to vector<1x32x128xf32>
      %cst_77 = arith.constant dense<0.000000e+00> : vector<1xf32>
      %188 = vector.multi_reduction <add>, %187, %cst_77 [1, 2] : vector<1x32x128xf32> to vector<1xf32>
      %189 = vector.shape_cast %188 : vector<1xf32> to vector<1x1x1xf32>
      %190 = vector.extract %189[0, 0, 0] : f32 from vector<1x1x1xf32>
      %c0_i32_78 = arith.constant 0 : i32
      %191 = vector.broadcast %c0_i32_78 : i32 to vector<8x128xi32>
      %192 = arith.cmpi eq, %97, %191 : vector<8x128xi32>
      %c1_i32_79 = arith.constant 1 : i32
      %193 = vector.broadcast %c1_i32_79 : i32 to vector<8x128xi32>
      %194 = arith.cmpi eq, %98, %193 : vector<8x128xi32>
      %195 = arith.andi %192, %194 : vector<8x128xi1>
      %cst_80 = arith.constant 0.000000e+00 : f32
      %196 = vector.broadcast %185 : f32 to vector<8x128xf32>
      %197 = vector.broadcast %cst_80 : f32 to vector<8x128xf32>
      %198 = arith.select %195, %196, %197 : vector<8x128xi1>, vector<8x128xf32>
      %199 = arith.addf %161, %198 : vector<8x128xf32>
      %c1_i32_81 = arith.constant 1 : i32
      %200 = vector.broadcast %c1_i32_81 : i32 to vector<8x128xi32>
      %201 = arith.cmpi eq, %97, %200 : vector<8x128xi32>
      %c1_i32_82 = arith.constant 1 : i32
      %202 = vector.broadcast %c1_i32_82 : i32 to vector<8x128xi32>
      %203 = arith.cmpi eq, %98, %202 : vector<8x128xi32>
      %204 = arith.andi %201, %203 : vector<8x128xi1>
      %cst_83 = arith.constant 0.000000e+00 : f32
      %205 = vector.broadcast %190 : f32 to vector<8x128xf32>
      %206 = vector.broadcast %cst_83 : f32 to vector<8x128xf32>
      %207 = arith.select %204, %205, %206 : vector<8x128xi1>, vector<8x128xf32>
      %208 = arith.addf %199, %207 : vector<8x128xf32>
      %c4_i32_84 = arith.constant 4 : i32
      %209 = tpu.dynamic_rotate %114 by %c4_i32_84 dim 1 : vector<32x128xf32>, i32 -> vector<32x128xf32>
      %c4_i32_85 = arith.constant 4 : i32
      %210 = tpu.dynamic_rotate %112 by %c4_i32_85 dim 1 : vector<32x128xf32>, i32 -> vector<32x128xf32>
      %211 = arith.subf %114, %209 : vector<32x128xf32>
      %212 = math.absf %211 : vector<32x128xf32>
      %213 = arith.mulf %112, %210 : vector<32x128xf32>
      %214 = arith.mulf %212, %213 : vector<32x128xf32>
      %215 = arith.mulf %214, %66 : vector<32x128xf32>
      %216 = vector.shape_cast %215 : vector<32x128xf32> to vector<1x32x128xf32>
      %cst_86 = arith.constant dense<0.000000e+00> : vector<1xf32>
      %217 = vector.multi_reduction <add>, %216, %cst_86 [1, 2] : vector<1x32x128xf32> to vector<1xf32>
      %218 = vector.shape_cast %217 : vector<1xf32> to vector<1x1x1xf32>
      %219 = vector.extract %218[0, 0, 0] : f32 from vector<1x1x1xf32>
      %cst_87 = arith.constant 0.000000e+00 : f32
      %220 = arith.addf %cst_87, %219 : f32
      %c4_i32_88 = arith.constant 4 : i32
      %221 = tpu.dynamic_rotate %114 by %c4_i32_88 dim 0 : vector<32x128xf32>, i32 -> vector<32x128xf32>
      %c4_i32_89 = arith.constant 4 : i32
      %222 = tpu.dynamic_rotate %112 by %c4_i32_89 dim 0 : vector<32x128xf32>, i32 -> vector<32x128xf32>
      %223 = arith.subf %114, %221 : vector<32x128xf32>
      %224 = math.absf %223 : vector<32x128xf32>
      %225 = arith.mulf %112, %222 : vector<32x128xf32>
      %226 = arith.mulf %224, %225 : vector<32x128xf32>
      %227 = arith.mulf %226, %72 : vector<32x128xf32>
      %228 = vector.shape_cast %227 : vector<32x128xf32> to vector<1x32x128xf32>
      %cst_90 = arith.constant dense<0.000000e+00> : vector<1xf32>
      %229 = vector.multi_reduction <add>, %228, %cst_90 [1, 2] : vector<1x32x128xf32> to vector<1xf32>
      %230 = vector.shape_cast %229 : vector<1xf32> to vector<1x1x1xf32>
      %231 = vector.extract %230[0, 0, 0] : f32 from vector<1x1x1xf32>
      %232 = arith.addf %220, %231 : f32
      %233 = arith.mulf %112, %60 : vector<32x128xf32>
      %234 = vector.shape_cast %233 : vector<32x128xf32> to vector<1x32x128xf32>
      %cst_91 = arith.constant dense<0.000000e+00> : vector<1xf32>
      %235 = vector.multi_reduction <add>, %234, %cst_91 [1, 2] : vector<1x32x128xf32> to vector<1xf32>
      %236 = vector.shape_cast %235 : vector<1xf32> to vector<1x1x1xf32>
      %237 = vector.extract %236[0, 0, 0] : f32 from vector<1x1x1xf32>
      %c0_i32_92 = arith.constant 0 : i32
      %238 = vector.broadcast %c0_i32_92 : i32 to vector<8x128xi32>
      %239 = arith.cmpi eq, %97, %238 : vector<8x128xi32>
      %c2_i32_93 = arith.constant 2 : i32
      %240 = vector.broadcast %c2_i32_93 : i32 to vector<8x128xi32>
      %241 = arith.cmpi eq, %98, %240 : vector<8x128xi32>
      %242 = arith.andi %239, %241 : vector<8x128xi1>
      %cst_94 = arith.constant 0.000000e+00 : f32
      %243 = vector.broadcast %232 : f32 to vector<8x128xf32>
      %244 = vector.broadcast %cst_94 : f32 to vector<8x128xf32>
      %245 = arith.select %242, %243, %244 : vector<8x128xi1>, vector<8x128xf32>
      %246 = arith.addf %208, %245 : vector<8x128xf32>
      %c1_i32_95 = arith.constant 1 : i32
      %247 = vector.broadcast %c1_i32_95 : i32 to vector<8x128xi32>
      %248 = arith.cmpi eq, %97, %247 : vector<8x128xi32>
      %c2_i32_96 = arith.constant 2 : i32
      %249 = vector.broadcast %c2_i32_96 : i32 to vector<8x128xi32>
      %250 = arith.cmpi eq, %98, %249 : vector<8x128xi32>
      %251 = arith.andi %248, %250 : vector<8x128xi1>
      %cst_97 = arith.constant 0.000000e+00 : f32
      %252 = vector.broadcast %237 : f32 to vector<8x128xf32>
      %253 = vector.broadcast %cst_97 : f32 to vector<8x128xf32>
      %254 = arith.select %251, %252, %253 : vector<8x128xi1>, vector<8x128xf32>
      %255 = arith.addf %246, %254 : vector<8x128xf32>
      %c8_i32_98 = arith.constant 8 : i32
      %256 = tpu.dynamic_rotate %114 by %c8_i32_98 dim 1 : vector<32x128xf32>, i32 -> vector<32x128xf32>
      %c8_i32_99 = arith.constant 8 : i32
      %257 = tpu.dynamic_rotate %112 by %c8_i32_99 dim 1 : vector<32x128xf32>, i32 -> vector<32x128xf32>
      %258 = arith.subf %114, %256 : vector<32x128xf32>
      %259 = math.absf %258 : vector<32x128xf32>
      %260 = arith.mulf %112, %257 : vector<32x128xf32>
      %261 = arith.mulf %259, %260 : vector<32x128xf32>
      %262 = arith.mulf %261, %90 : vector<32x128xf32>
      %263 = vector.shape_cast %262 : vector<32x128xf32> to vector<1x32x128xf32>
      %cst_100 = arith.constant dense<0.000000e+00> : vector<1xf32>
      %264 = vector.multi_reduction <add>, %263, %cst_100 [1, 2] : vector<1x32x128xf32> to vector<1xf32>
      %265 = vector.shape_cast %264 : vector<1xf32> to vector<1x1x1xf32>
      %266 = vector.extract %265[0, 0, 0] : f32 from vector<1x1x1xf32>
      %cst_101 = arith.constant 0.000000e+00 : f32
      %267 = arith.addf %cst_101, %266 : f32
      %c8_i32_102 = arith.constant 8 : i32
      %268 = tpu.dynamic_rotate %114 by %c8_i32_102 dim 0 : vector<32x128xf32>, i32 -> vector<32x128xf32>
      %c8_i32_103 = arith.constant 8 : i32
      %269 = tpu.dynamic_rotate %112 by %c8_i32_103 dim 0 : vector<32x128xf32>, i32 -> vector<32x128xf32>
      %270 = arith.subf %114, %268 : vector<32x128xf32>
      %271 = math.absf %270 : vector<32x128xf32>
      %272 = arith.mulf %112, %269 : vector<32x128xf32>
      %273 = arith.mulf %271, %272 : vector<32x128xf32>
      %274 = arith.mulf %273, %96 : vector<32x128xf32>
      %275 = vector.shape_cast %274 : vector<32x128xf32> to vector<1x32x128xf32>
      %cst_104 = arith.constant dense<0.000000e+00> : vector<1xf32>
      %276 = vector.multi_reduction <add>, %275, %cst_104 [1, 2] : vector<1x32x128xf32> to vector<1xf32>
      %277 = vector.shape_cast %276 : vector<1xf32> to vector<1x1x1xf32>
      %278 = vector.extract %277[0, 0, 0] : f32 from vector<1x1x1xf32>
      %279 = arith.addf %267, %278 : f32
      %280 = arith.mulf %112, %84 : vector<32x128xf32>
      %281 = vector.shape_cast %280 : vector<32x128xf32> to vector<1x32x128xf32>
      %cst_105 = arith.constant dense<0.000000e+00> : vector<1xf32>
      %282 = vector.multi_reduction <add>, %281, %cst_105 [1, 2] : vector<1x32x128xf32> to vector<1xf32>
      %283 = vector.shape_cast %282 : vector<1xf32> to vector<1x1x1xf32>
      %284 = vector.extract %283[0, 0, 0] : f32 from vector<1x1x1xf32>
      %c0_i32_106 = arith.constant 0 : i32
      %285 = vector.broadcast %c0_i32_106 : i32 to vector<8x128xi32>
      %286 = arith.cmpi eq, %97, %285 : vector<8x128xi32>
      %c3_i32_107 = arith.constant 3 : i32
      %287 = vector.broadcast %c3_i32_107 : i32 to vector<8x128xi32>
      %288 = arith.cmpi eq, %98, %287 : vector<8x128xi32>
      %289 = arith.andi %286, %288 : vector<8x128xi1>
      %cst_108 = arith.constant 0.000000e+00 : f32
      %290 = vector.broadcast %279 : f32 to vector<8x128xf32>
      %291 = vector.broadcast %cst_108 : f32 to vector<8x128xf32>
      %292 = arith.select %289, %290, %291 : vector<8x128xi1>, vector<8x128xf32>
      %293 = arith.addf %255, %292 : vector<8x128xf32>
      %c1_i32_109 = arith.constant 1 : i32
      %294 = vector.broadcast %c1_i32_109 : i32 to vector<8x128xi32>
      %295 = arith.cmpi eq, %97, %294 : vector<8x128xi32>
      %c3_i32_110 = arith.constant 3 : i32
      %296 = vector.broadcast %c3_i32_110 : i32 to vector<8x128xi32>
      %297 = arith.cmpi eq, %98, %296 : vector<8x128xi32>
      %298 = arith.andi %295, %297 : vector<8x128xi1>
      %cst_111 = arith.constant 0.000000e+00 : f32
      %299 = vector.broadcast %284 : f32 to vector<8x128xf32>
      %300 = vector.broadcast %cst_111 : f32 to vector<8x128xf32>
      %301 = arith.select %298, %299, %300 : vector<8x128xi1>, vector<8x128xf32>
      %302 = arith.addf %293, %301 : vector<8x128xf32>
      %c0_112 = arith.constant 0 : index
      %c0_113 = arith.constant 0 : index
      %303 = vector.load %arg5[%c0_112, %c0_113] : memref<8x128xf32, #tpu.memory_space<vmem>>, vector<8x128xf32>
      %304 = arith.addf %303, %302 : vector<8x128xf32>
      %c0_114 = arith.constant 0 : index
      %c0_115 = arith.constant 0 : index
      %305 = vector.load %arg5[%c0_114, %c0_115] : memref<8x128xf32, #tpu.memory_space<vmem>>, vector<8x128xf32>
      tpu.vector_store %arg5[%c0_114, %c0_115], %304 {strides = array<i32>} : memref<8x128xf32, #tpu.memory_space<vmem>>, vector<8x128xf32>,
    }
    %c2_i32_43 = arith.constant 2 : i32
    %c0_44 = arith.constant 0 : index
    %c0_45 = arith.constant 0 : index
    %100 = vector.load %arg5[%c0_44, %c0_45] : memref<8x128xf32, #tpu.memory_space<vmem>>, vector<8x128xf32>
    %c0_46 = arith.constant 0 : index
    %c0_47 = arith.constant 0 : index
    %c0_48 = arith.constant 0 : index
    %101 = vector.load %arg4[%c0_46, %c0_47, %c0_48] : memref<1x8x128xf32, #tpu.memory_space<vmem>>, vector<1x8x128xf32>
    %102 = vector.shape_cast %101 : vector<1x8x128xf32> to vector<8x128xf32>
    %103 = vector.shape_cast %100 : vector<8x128xf32> to vector<1x8x128xf32>
    tpu.vector_store %arg4[%c0_46, %c0_47, %c0_48], %103 {strides = array<i32>} : memref<1x8x128xf32, #tpu.memory_space<vmem>>, vector<1x8x128xf32>,
    return
  }
  func.func @transform_0(%arg0: i32) -> (i32, i32, i32) {
    %c0_i32 = arith.constant 0 : i32
    %c0_i32_0 = arith.constant 0 : i32
    %c0_i32_1 = arith.constant 0 : i32
    return %arg0, %c0_i32, %c0_i32_0 : i32, i32, i32
  }
  func.func @transform_1(%arg0: i32) -> (i32, i32, i32) {
    %c0_i32 = arith.constant 0 : i32
    %c0_i32_0 = arith.constant 0 : i32
    %c0_i32_1 = arith.constant 0 : i32
    return %arg0, %c0_i32, %c0_i32_0 : i32, i32, i32
  }
  func.func @transform_2(%arg0: i32) -> (i32, i32, i32) {
    %c0_i32 = arith.constant 0 : i32
    %c0_i32_0 = arith.constant 0 : i32
    %c0_i32_1 = arith.constant 0 : i32
    return %arg0, %c0_i32, %c0_i32_0 : i32, i32, i32
  }
  func.func @transform_3(%arg0: i32) -> (i32, i32, i32) {
    %c0_i32 = arith.constant 0 : i32
    %c0_i32_0 = arith.constant 0 : i32
    %c0_i32_1 = arith.constant 0 : i32
    return %arg0, %c0_i32, %c0_i32_0 : i32, i32, i32
  }
}

</mosaic_0001>

<bundles_post_ra>
// kernel: gradient_loss_multiscale.1
= control target key start
LH: loop header
LB: loop body
LE: loop exit
PB: predicated region body
PF: predicated region fallthrough
CT: control target
= control target key end

     0   :  { %8 = vsyncpa [#allocation4], 0  ;;  %s2072_s0 = inlined_call_operand.hbm [shape: f32[4,32,128], index: 0, kind: input, shape index: {}]   ;;  %s2073_s1 = inlined_call_operand.hbm [shape: f32[4,32,128], index: 1, kind: input, shape index: {}]   ;;  %s2074_s2 = inlined_call_operand.hbm [shape: f32[4,32,128], index: 2, kind: input, shape index: {}]   ;;  %s2075_s3 = inlined_call_operand.vmem [shape: f32[2,8,128], index: 3, kind: output, shape index: {}]  }
   0x1   :  { %10 = vsyncpa [#allocation4 + $0x1], 0 }
   0x2   :  { %11 = vsyncpa [#allocation6], 0 }
   0x3   :  { %13 = vsyncpa [#allocation6 + $0x1], 0  ;;  %s1317_s12 = smov 0   ;;  %s1319_s13 = smov 0  }
   0x4   :  { %s1321_s14 = smov 0   ;;  %s1323_s15 = smov 0  }
   0x5 LB: > { %s1336_s16 = sadd.s32 4294967295, %s1281_s15   ;;  %s1339_s17 = sadd.s32 1, %s1281_s15   ;;  %s1281_s15 = sphi %s1323_s15, %s2143_s15   ;;  %s1277_s14 = sphi %s1321_s14, %s2142_s14   ;;  %s1273_s13 = sphi %s1319_s13, %s2141_s13   ;;  %s1269_s12 = sphi %s1317_s12, %s2140_s12  }
   0x6   : > { %s23_s18 = ssub.s32 %s1281_s15, %s1339_s17  ;;  %s26_s19 = sadd.s32 1, %s1277_s14 }
   0x7   : > { %p24_p0 = scmp.eq.s32.totalorder %s23_s18, 0  ;;  %p33_p1 = scmp.ne.s32.totalorder %s1277_s14, %s1273_s13 }
   0x8   : > { %p34_p2 = scmp.eq.s32.totalorder %s1281_s15, 0  ;;  %p39_p3 = scmp.ne.s32.totalorder %s1273_s13, %s1269_s12 }
   0x9   : > { %s1349_s20 = scalar_select %p24_p0, %s1277_s14, %s26_s19  }
   0xa   : > { %p35_p4 = por %p34_p2, %p33_p1  ;;  %p40_p5 = scmp.eq.s32.totalorder %s1336_s16, 0 }
   0xb   : > { %p1107_p6 = scmp.lt.s32.totalorder %s1281_s15, 2  ;;  %s141_s22 = sand.u32 1, %s1277_s14  }
   0xc   : > { %p1353_p7 = por %p40_p5, %p39_p3  ;;  %s1360_s23 = sshll.u32 %s141_s22, 6 }
   0xd   : > { %s1363_s24 = sshll.u32 %s1281_s15, 10  ;;  %p1365_p8 = pnand %p1107_p6, %p35_p4 }
   0xe   : > { %s2082_s21 = scalar_select %p1353_p7, 1, 0 }
   0xf   : > { %s163_s26 = sand.u32 1, %s1281_s15   ;;  %s1374_s29 = scalar_lea.hbm %s2073_s1, %s1363_s24 }
  0x10   : > { %s167_s30 = scalar_lea.vmem [#allocation5], %s1360_s23  ;;  %s1381_s5 = scalar_lea.sflag [#allocation6], %s163_s26 }
  0x11   : > { %s175_s4 = sshll.u32 %s167_s30, 4  ;;  %s1155_s6 = scalar_lea.hbm %s1374_s29, 1024  ;;  %s1378_s4 = int_to_ptr.vmem [resolvable:$true] %s175_s4 }
  0x12   : > { %p1156_p11 = scmp.ne.s32.totalorder %s1374_s29, %s1155_s6  ;;  %p1387_p12 = pneg %p1365_p8 }
  0x13   : > { %s1160_s10 = scalar_lea.hbm %s2073_s1, 2048  ;;  %p1161_p1 = scmp.lt.s32.totalorder %s1374_s29, %s2073_s1 }
  0x14   : > { %p1158_p13 = pnand %p1387_p12, %p1156_p11  ;;  %p1162_p2 = scmp.lt.s32.totalorder %s1160_s10, %s1155_s6 }
  0x16   : > { %p1159_p0 = pneg %p1158_p13  ;;  %p1163_p3 = por %p1162_p2, %p1161_p1 }
  0x18   : > { %p1164_p4 = pnand %p1163_p3, %p1159_p0 }
  0x1a   : > { %1167 = shalt.err (!%p1164_p4)
}
  0x1b   : > { %s1168_s18 = scalar_lea.vmem %s1378_s4, 1024  ;;  %s1287_s19 = smov [#allocation5]  }
  0x1c   : > { %p1169_p5 = scmp.ne.s32.totalorder %s1378_s4, %s1168_s18  ;;  %s1173_s26 = sshll.u32 %s1287_s19, 4  ;;  %s1174_s26 = int_to_ptr.vmem [resolvable:$false] %s1173_s26 }
  0x1d   : > { %s1175_s27 = scalar_lea.vmem %s1174_s26, 2048  ;;  %p1176_p13 = scmp.lt.s32.totalorder %s1378_s4, %s1174_s26 }
  0x1e   : > { %p1171_p6 = pnand %p1169_p5, %p1387_p12  ;;  %p1177_p9 = scmp.lt.s32.totalorder %s1175_s27, %s1168_s18 }
  0x20   : > { %p1172_p11 = pneg %p1171_p6  ;;  %p1178_p10 = por %p1177_p9, %p1176_p13 }
  0x22   : > { %p1179_p7 = pnand %p1178_p10, %p1172_p11 }
  0x24   : > { %1182 = shalt.err (!%p1179_p7)
}
  0x25   : > { %s1288_s28 = smov 128   ;;  %s1289_s30 = smov 8  }
  0x26   : > { %1103 = dma.hbm_to_vmem [thread:$0]  (!%p1365_p8), %s1374_s29, 1024, %s1378_s4, %s1381_s5, %s1288_s28, %s1288_s28, %s1289_s30  }
  0x27   : > { %p2085_p9 = scmp.lt.s32.totalorder %s1281_s15, 3  ;;  %p2086_p7 = scmp.ge.s32.totalorder %s1281_s15, 1 }
  0x28   : > { %s1425_s10 = scalar_lea.hbm %s2072_s0, %s1363_s24  ;;  %s145_s11 = scalar_lea.vmem [#allocation3], %s1360_s23 }
  0x29   : > { %p1417_p10 = pnand %p2086_p7, %p2085_p9  ;;  %s153_s12 = sshll.u32 %s145_s11, 4  ;;  %s1428_s12 = int_to_ptr.vmem [resolvable:$true] %s153_s12 }
  0x2a   : > { %s1434_s15 = scalar_lea.hbm %s2074_s2, %s1363_s24  ;;  %s142_s4 = scalar_lea.sflag [#allocation4], %s141_s22 }
  0x2b   : > { %s2087_s6 = scalar_select %p1417_p10, 1, 0 }
  0x2c   : > { %s1183_s19 = scalar_lea.hbm %s1425_s10, 1024  ;;  %s1188_s8 = scalar_lea.hbm %s2072_s0, 2048 }
  0x2d   : > { %p1184_p0 = scmp.ne.s32.totalorder %s1425_s10, %s1183_s19  ;;  %p1189_p3 = scmp.lt.s32.totalorder %s1425_s10, %s2072_s0 }
  0x2e   : > { %p1190_p4 = scmp.lt.s32.totalorder %s1188_s8, %s1183_s19 }
  0x2f   : > { %p1186_p1 = pnand %p1184_p0, %p1387_p12 }
  0x30   : > { %p1191_p5 = por %p1190_p4, %p1189_p3 }
  0x31   : > { %p1187_p2 = pneg %p1186_p1 }
  0x33   : > { %p1192_p6 = pnand %p1191_p5, %p1187_p2 }
  0x35   : > { %1195 = shalt.err (!%p1192_p6)
}
  0x36   : > { %s1196_s22 = scalar_lea.vmem %s1428_s12, 1024  ;;  %s1290_s24 = smov [#allocation3]  }
  0x37   : > { %p1197_p11 = scmp.ne.s32.totalorder %s1428_s12, %s1196_s22  ;;  %s1201_s18 = sshll.u32 %s1290_s24, 4  ;;  %s1202_s18 = int_to_ptr.vmem [resolvable:$false] %s1201_s18 }
  0x38   : > { %s1203_s29 = scalar_lea.vmem %s1202_s18, 2048  ;;  %p1204_p7 = scmp.lt.s32.totalorder %s1428_s12, %s1202_s18 }
  0x39   : > { %p1199_p13 = pnand %p1197_p11, %p1387_p12  ;;  %p1205_p0 = scmp.lt.s32.totalorder %s1203_s29, %s1196_s22 }
  0x3b   : > { %p1200_p9 = pneg %p1199_p13  ;;  %p1206_p1 = por %p1205_p0, %p1204_p7 }
  0x3d   : > { %p1207_p10 = pnand %p1206_p1, %p1200_p9 }
  0x3f   : > { %1210 = shalt.err (!%p1207_p10)
}
  0x40   : > { %1100 = dma.hbm_to_vmem [thread:$0]  (!%p1365_p8), %s1425_s10, 1024, %s1428_s12, %s142_s4, %s1288_s28, %s1288_s28, %s1289_s30  }
  0x41   : > { %s189_s19 = scalar_lea.vmem [#allocation7], %s1360_s23  ;;  %s1211_s27 = scalar_lea.hbm %s1434_s15, 1024 }
  0x42   : > { %s197_s26 = sshll.u32 %s189_s19, 4  ;;  %p1212_p2 = scmp.ne.s32.totalorder %s1434_s15, %s1211_s27  ;;  %s198_s26 = int_to_ptr.vmem [resolvable:$true] %s197_s26 }
  0x43   : > { %s1216_s11 = scalar_lea.hbm %s2074_s2, 2048  ;;  %p1217_p4 = scmp.lt.s32.totalorder %s1434_s15, %s2074_s2 }
  0x44   : > { %p1214_p10 = pnand %p1212_p2, %p1387_p12  ;;  %p1218_p5 = scmp.lt.s32.totalorder %s1216_s11, %s1211_s27 }
  0x46   : > { %p1215_p3 = pneg %p1214_p10  ;;  %p1219_p6 = por %p1218_p5, %p1217_p4 }
  0x48   : > { %p1220_p11 = pnand %p1219_p6, %p1215_p3 }
  0x4a   : > { %1223 = shalt.err (!%p1220_p11)
}
  0x4b   : > { %s1224_s23 = scalar_lea.vmem %s198_s26, 1024  ;;  %s1291_s10 = smov [#allocation7]  }
  0x4c   : > { %p1225_p13 = scmp.ne.s32.totalorder %s198_s26, %s1224_s23  ;;  %s1229_s12 = sshll.u32 %s1291_s10, 4  ;;  %s1230_s12 = int_to_ptr.vmem [resolvable:$false] %s1229_s12 }
  0x4d   : > { %s1231_s4 = scalar_lea.vmem %s1230_s12, 2048  ;;  %p1232_p0 = scmp.lt.s32.totalorder %s198_s26, %s1230_s12 }
  0x4e   : > { %p1227_p9 = pnand %p1225_p13, %p1387_p12  ;;  %p1233_p1 = scmp.lt.s32.totalorder %s1231_s4, %s1224_s23 }
  0x50   : > { %p1228_p7 = pneg %p1227_p9  ;;  %p1234_p2 = por %p1233_p1, %p1232_p0 }
  0x52   : > { %p1235_p10 = pnand %p1234_p2, %p1228_p7 }
  0x54   : > { %1238 = shalt.err (!%p1235_p10)
}
  0x55   : > { %1106 = dma.hbm_to_vmem [thread:$0]  (!%p1365_p8), %s1434_s15, 1024, %s198_s26, %s1381_s5, %s1288_s28, %s1288_s28, %s1289_s30  }
  0x56   : > { %p2088_p12 = scmp.ne.s32.totalorder %s2087_s6, 0 }
  0x58   : > { %209 = sbr.rel (%p2088_p12) target bundleno = 545 (0x221), region = 32 }
  0x5d   : > { %s211_s7 = sand.u32 1, %s1273_s13   ;;  %p2089_p3 = scmp.ne.s32.totalorder %s2082_s21, 0 }
  0x5e   : > { %s1485_s18 = sshll.u32 %s211_s7, 6  ;;  %s212_s29 = scalar_lea.sflag [#allocation4], %s211_s7 }
  0x5f   : > { %s215_s19 = scalar_lea.vmem [#allocation3], %s1485_s18 }
  0x60   : > { %1260 = dma.done.wait (%p2089_p3), %s212_s29, 1024  }
  0x61   : > { %1262 = vsyncadd (%p2089_p3), %s212_s29, 4294966272  ;;  %s220_s25 = sand.u32 1, %s1336_s16   ;;  %s224_s28 = scalar_lea.vmem [#allocation5], %s1485_s18 }
  0x62   : > { %s221_s5 = scalar_lea.sflag [#allocation6], %s220_s25 }
  0x63   : > { %1264 = dma.done.wait (%p2089_p3), %s221_s5, 2048  }
  0x64   : > { %1266 = vsyncadd (%p2089_p3), %s221_s5, 4294965248  ;;  %p268_p8 = scmp.lt.s32.totalorder %s1336_s16, 1  ;;  %v273_v0 = vlaneseq  ;;  %v1292_v1 = vmov 0.0   ;;  %s1758_s26 = smov 0  }
  0x65   : > { %272 = vst [vmem:[#allocation2] sm:$0xff] %v1292_v1 }
  0x66   : > { %s2145_s16 = smov (!%p268_p8, %s1336_s16), 1  ;;  %v1501_v2 = vshrl.u32 %v273_v0, 7  ;;  %v1503_v3 = vand.u32 127, %v273_v0 }
  0x67   : > { %s1057_s30 = sshll.u32 %s2145_s16, 3  ;;  %s233_s16 = scalar_lea.vmem [#allocation7], %s1485_s18 }
  0x68   : > { %2090 = vst [vmem:[#allocation10_spill] sm:$0xff] %v1503_v3  ;;  %v1506_v4 = vadd.s32 8, %v1501_v2  ;;  %v1509_v5 = vadd.s32 16, %v1501_v2  ;;  %v1512_v6 = vadd.s32 24, %v1501_v2  ;;  %vm280_vm0 = vcmp.ge.s32.totalorder %v1503_v3, 1  ;;  %s1518_s15 = scalar_lea.vmem %s2075_s3, %s1057_s30 }
  0x69   : > { %v1521_v7 = vsel %vm280_vm0, 1.0, %v1292_v1  ;;  %vm282_vm1 = vcmp.ge.s32.totalorder %v1501_v2, 1  ;;  %v290_v8 = vand.u32 1, %v1501_v2  ;;  %v298_v9 = vand.u32 1, %v1503_v3 }
  0x6a   : > { %v1527_v10 = vsel %vm282_vm1, 1.0, %v1292_v1  ;;  %v291_v11 = vand.u32 1, %v1506_v4  ;;  %v292_v12 = vand.u32 1, %v1509_v5  ;;  %v293_v13 = vand.u32 1, %v1512_v6 }
  0x6b   : > { %2091 = vst [vmem:[#allocation11_spill] sm:$0xff] %v1527_v10  ;;  %vm294_vm2 = vcmp.eq.s32.totalorder %v290_v8, 0  ;;  %vm1532_vm3 = vcmp.eq.s32.totalorder %v298_v9, 0  ;;  %vm308_vm9 = vcmp.ge.s32.totalorder %v1503_v3, 2  ;;  %v329_v21 = vand.u32 3, %v1501_v2 }
  0x6c   : > { %vm1536_vm4 = vcmp.eq.s32.totalorder %v291_v11, 0  ;;  %vm1540_vm5 = vcmp.eq.s32.totalorder %v292_v12, 0  ;;  %vm1544_vm6 = vcmp.eq.s32.totalorder %v293_v13, 0  ;;  %vm1550_vm7 = vmand %vm294_vm2, %vm1532_vm3  ;;  %v337_v22 = vand.u32 3, %v1503_v3 }
  0x6d   : > { %vm301_vm8 = vmand %vm1536_vm4, %vm1532_vm3  ;;  %v1561_v19 = vsel %vm1550_vm7, 1.0, %v1292_v1  ;;  %v330_v24 = vand.u32 3, %v1506_v4  ;;  %v331_v26 = vand.u32 3, %v1509_v5  ;;  %vm317_vm14 = vcmp.ge.s32.totalorder %v1501_v2, 2 }
  0x6e   : > { %2102 = vst [vmem:[#allocation12_spill] sm:$0xff] %v1561_v19  ;;  %vm302_vm10 = vmand %vm1540_vm5, %vm1532_vm3  ;;  %v1569_v20 = vsel %vm301_vm8, 1.0, %v1292_v1  ;;  %v332_v28 = vand.u32 3, %v1512_v6  ;;  %vm333_vm0 = vcmp.eq.s32.totalorder %v329_v21, 0  ;;  %vm1601_vm1 = vcmp.eq.s32.totalorder %v337_v22, 0 }
  0x6f   : > { %2103 = vst [vmem:[#allocation13_spill] sm:$0xff] %v1569_v20  ;;  %vm303_vm11 = vmand %vm1544_vm6, %vm1532_vm3  ;;  %v1578_v23 = vsel %vm302_vm10, 1.0, %v1292_v1  ;;  %vm1610_vm3 = vcmp.eq.s32.totalorder %v330_v24, 0  ;;  %vm1619_vm5 = vcmp.eq.s32.totalorder %v331_v26, 0  ;;  %v368_v40 = vand.u32 7, %v1501_v2 }
  0x70   : > { %2104 = vst [vmem:[#allocation14_spill] sm:$0xff] %v1578_v23  ;;  %v1582_v25 = vsel %vm303_vm11, 1.0, %v1292_v1  ;;  %vm309_vm12 = vmand %vm1550_vm7, %vm308_vm9  ;;  %vm1626_vm6 = vcmp.eq.s32.totalorder %v332_v28, 0  ;;  %v376_v41 = vand.u32 7, %v1503_v3  ;;  %v369_v43 = vand.u32 7, %v1506_v4 }
  0x71   : > { %2105 = vst [vmem:[#allocation15_spill] sm:$0xff] %v1582_v25  ;;  %vm310_vm13 = vmand %vm301_vm8, %vm308_vm9  ;;  %v1592_v27 = vsel %vm309_vm12, 1.0, %v1292_v1  ;;  %v370_v45 = vand.u32 7, %v1509_v5  ;;  %v371_v47 = vand.u32 7, %v1512_v6 }
  0x72   : > { %vm311_vm15 = vmand %vm302_vm10, %vm308_vm9  ;;  %v1599_v29 = vsel %vm310_vm13, 1.0, %v1292_v1 }
  0x73   : > { %vm312_vm2 = vmand %vm303_vm11, %vm308_vm9  ;;  %v1608_v31 = vsel %vm311_vm15, 1.0, %v1292_v1  ;;  %vm347_vm9 = vcmp.ge.s32.totalorder %v1503_v3, 4 }
  0x74   : > { %v1615_v33 = vsel %vm312_vm2, 1.0, %v1292_v1  ;;  %vm321_vm4 = vmand %vm1550_vm7, %vm317_vm14  ;;  %vm356_vm14 = vcmp.ge.s32.totalorder %v1501_v2, 4 }
  0x75   : > { %v1624_v35 = vsel %vm321_vm4, 1.0, %v1292_v1  ;;  %vm1632_vm8 = vmand %vm333_vm0, %vm1601_vm1  ;;  %vm1683_vm0 = vcmp.eq.s32.totalorder %v368_v40, 0 }
  0x76   : > { %vm340_vm7 = vmand %vm1610_vm3, %vm1601_vm1  ;;  %v1643_v38 = vsel %vm1632_vm8, 1.0, %v1292_v1  ;;  %vm1696_vm3 = vcmp.eq.s32.totalorder %v369_v43, 0 }
  0x77   : > { %vm341_vm10 = vmand %vm1619_vm5, %vm1601_vm1  ;;  %v1651_v39 = vsel %vm340_vm7, 1.0, %v1292_v1  ;;  %vm1705_vm5 = vcmp.eq.s32.totalorder %v370_v45, 0 }
  0x78   : > { %vm342_vm11 = vmand %vm1626_vm6, %vm1601_vm1  ;;  %v1660_v42 = vsel %vm341_vm10, 1.0, %v1292_v1  ;;  %vm1687_vm1 = vcmp.eq.s32.totalorder %v376_v41, 0  ;;  %vm1712_vm6 = vcmp.eq.s32.totalorder %v371_v47, 0 }
  0x79   : > { %v1664_v44 = vsel %vm342_vm11, 1.0, %v1292_v1  ;;  %vm348_vm12 = vmand %vm1632_vm8, %vm347_vm9 }
  0x7a   : > { %vm349_vm13 = vmand %vm340_vm7, %vm347_vm9  ;;  %v1674_v46 = vsel %vm348_vm12, 1.0, %v1292_v1 }
  0x7b   : > { %vm350_vm15 = vmand %vm341_vm10, %vm347_vm9  ;;  %v1681_v48 = vsel %vm349_vm13, 1.0, %v1292_v1 }
  0x7c   : > { %vm351_vm2 = vmand %vm342_vm11, %vm347_vm9  ;;  %v1694_v51 = vsel %vm350_vm15, 1.0, %v1292_v1  ;;  %vm386_vm9 = vcmp.ge.s32.totalorder %v1503_v3, 8 }
  0x7d   : > { %v1701_v53 = vsel %vm351_vm2, 1.0, %v1292_v1  ;;  %vm360_vm4 = vmand %vm1632_vm8, %vm356_vm14 }
  0x7e   : > { %v1710_v55 = vsel %vm360_vm4, 1.0, %v1292_v1  ;;  %vm378_vm7 = vmand %vm1683_vm0, %vm1687_vm1 }
  0x7f   : > { %vm379_vm8 = vmand %vm1696_vm3, %vm1687_vm1  ;;  %v1725_v57 = vsel %vm378_vm7, 1.0, %v1292_v1 }
  0x80   : > { %vm380_vm10 = vmand %vm1705_vm5, %vm1687_vm1  ;;  %v1733_v58 = vsel %vm379_vm8, 1.0, %v1292_v1 }
  0x81   : > { %vm381_vm11 = vmand %vm1712_vm6, %vm1687_vm1  ;;  %v1740_v59 = vsel %vm380_vm10, 1.0, %v1292_v1 }
  0x82   : > { %v1743_v60 = vsel %vm381_vm11, 1.0, %v1292_v1  ;;  %vm387_vm12 = vmand %vm378_vm7, %vm386_vm9 }
  0x83   : > { %vm388_vm13 = vmand %vm379_vm8, %vm386_vm9  ;;  %v1746_v61 = vsel %vm387_vm12, 1.0, %v1292_v1 }
  0x84   : > { %2126 = vst [vmem:[#allocation16_spill] sm:$0xff] %v1746_v61  ;;  %vm389_vm14 = vmand %vm380_vm10, %vm386_vm9  ;;  %v1749_v62 = vsel %vm388_vm13, 1.0, %v1292_v1 }
  0x85   : > { %2127 = vst [vmem:[#allocation17_spill] sm:$0xff] %v1749_v62  ;;  %vm390_vm15 = vmand %vm381_vm11, %vm386_vm9  ;;  %v1752_v63 = vsel %vm389_vm14, 1.0, %v1292_v1 }
  0x86   : > { %2128 = vst [vmem:[#allocation18_spill] sm:$0xff] %v1752_v63  ;;  %v1755_v0 = vsel %vm390_vm15, 1.0, %v1292_v1 }
  0x87   : > { %2129 = vst [vmem:[#allocation19_spill] sm:$0xff] %v1755_v0 }
  0x88 LB: >> { %v2130_v25 = vld [vmem:[#allocation15_spill] sm:$0xff]  ;;  %v2131_v23 = vld [vmem:[#allocation14_spill] sm:$0xff]  ;;  %v2132_v20 = vld [vmem:[#allocation13_spill] sm:$0xff]  ;;  %s1058_s27 = sshll.u32 %s1285_s26, 5  ;;  %s1293_s22 = smov 1   ;;  %vm490_vm0 = vcmp.lt.s32.totalorder %v1501_v2, 1  ;;  %s1285_s26 = sphi %s1758_s26, %s412_s26  }
  0x89   : >> { %s424_s8 = scalar_lea.vmem %s233_s16, %s1058_s27 [#allocation7]  ;;  %s414_s9 = scalar_lea.vmem %s215_s19, %s1058_s27 [#allocation3]  ;;  %vm612_vm1 = vcmp.lt.s32.totalorder %v1501_v2, 2  ;;  %v2133_v19 = vld [vmem:[#allocation12_spill] sm:$0xff]  ;;  %v2134_v10 = vld [vmem:[#allocation11_spill] sm:$0xff]  ;;  %vm736_vm2 = vcmp.lt.s32.totalorder %v1501_v2, 4  ;;  %vm548_vm3 = vcmp.eq.s32.totalorder %v1501_v2, 0  ;;  %vm554_vm5 = vcmp.eq.s32.totalorder %v1501_v2, 1 }
  0x8a   : >> { %v1768_v4 = vld [vmem:[%s424_s8 + $0x8] sm:$0xff]  ;;  %s419_s11 = scalar_lea.vmem %s224_s28, %s1058_s27 [#allocation5]  ;;  %v415_v1 = vld [vmem:[%s414_s9] sm:$0xff]  ;;  %v417_v6 = vld [vmem:[%s414_s9 + $0x10] sm:$0xff]  ;;  %s1294_s24 = smov 2  }
  0x8b   : >> { %447 = vrot.lane.b32.xlu0 %v1768_v4, %s1293_s22  ;;  %v416_v5 = vld [vmem:[%s414_s9 + $0x8] sm:$0xff]  ;;  %v420_v8 = vld [vmem:[%s419_s11] sm:$0xff]  ;;  %v1774_v11 = vld [vmem:[%s424_s8 + $0x10] sm:$0xff]  ;;  %s1295_s23 = smov 4   ;;  %s1296_s10 = smov 8   ;;  %v496_v54 = vrot.slane %v1768_v4, 7 }
  0x8c   : >> { %v421_v9 = vld [vmem:[%s419_s11 + $0x8] sm:$0xff]  ;;  %v422_v12 = vld [vmem:[%s419_s11 + $0x10] sm:$0xff]  ;;  %v429_v13 = vsub.f32 %v415_v1, %v420_v8  ;;  %v1776_v15 = vld [vmem:[%s424_s8] sm:$0xff]  ;;  %v619_v3 = vrot.slane %v1774_v11, 6  ;;  %s412_s26 = sadd.s32 1, %s1285_s26  }
  0x8d   : >> { %v430_v14 = vsub.f32 %v416_v5, %v421_v9  ;;  %v431_v16 = vsub.f32 %v417_v6, %v422_v12  ;;  %445 = vrot.lane.b32.xlu1 %v1776_v15, %s1293_s22  ;;  %v418_v17 = vld [vmem:[%s414_s9 + $0x18] sm:$0xff]  ;;  %v495_v40 = vrot.slane %v1776_v15, 7  ;;  %v617_v5 = vrot.slane %v1776_v15, 6  ;;  %p409_p4 = scmp.ge.s32.totalorder %s412_s26, 2  }
  0x8e   : >> { %v423_v18 = vld [vmem:[%s419_s11 + $0x18] sm:$0xff]  ;;  %v1781_v21 = vmul.f32 %v429_v13, %v1776_v15  ;;  %v618_v9 = vrot.slane %v1768_v4, 6  ;;  %v497_v13 = vrot.slane %v1774_v11, 7 }
  0x8f   : >> { %v1784_v22 = vmul.f32 %v431_v16, %v1774_v11  ;;  %v1787_v24 = vmul.f32 %v430_v14, %v1768_v4  ;;  %v432_v26 = vsub.f32 %v418_v17, %v423_v18  ;;  %v1793_v28 = vld [vmem:[%s424_s8 + $0x18] sm:$0xff] }
  0x90   : >> { %437 = vrot.lane.b32.xlu0 %v1781_v21, %s1293_s22  ;;  %v486_v32 = vrot.slane %v1781_v21, 7  ;;  %v498_v41 = vrot.slane %v1793_v28, 7  ;;  %v608_v43 = vrot.slane %v1781_v21, 6  ;;  %v620_v12 = vrot.slane %v1793_v28, 6 }
  0x91   : >> { %441 = vrot.lane.b32.xlu1 %v1784_v22, %s1293_s22  ;;  %v1798_v30 = vmul.f32 %v432_v26, %v1793_v28  ;;  %v487_v36 = vrot.slane %v1787_v24, 7  ;;  %v609_v45 = vrot.slane %v1787_v24, 6  ;;  %v488_v49 = vrot.slane %v1784_v22, 7 }
  0x92   : >> { %v502_v56 = vsel %vm490_vm0, %v498_v41, %v495_v40  ;;  %v610_v1 = vrot.slane %v1784_v22, 6  ;;  %v501_v26 = vsel %vm490_vm0, %v495_v40, %v496_v54  ;;  %v500_v40 = vsel %vm490_vm0, %v496_v54, %v497_v13 }
  0x93   : >> { %v489_v34 = vrot.slane %v1798_v30, 7  ;;  %v611_v47 = vrot.slane %v1798_v30, 6  ;;  %v493_v50 = vsel %vm490_vm0, %v486_v32, %v487_v36  ;;  %v615_v6 = vsel %vm612_vm1, %v608_v43, %v609_v45 }
  0x94   : >> { %439 = vrot.lane.b32.xlu0 %v1787_v24, %s1293_s22  ;;  %v504_v14 = vsub.f32 %v1787_v24, %v493_v50  ;;  %v492_v16 = vsel %vm490_vm0, %v487_v36, %v488_v49  ;;  %v511_v18 = vmul.f32 %v502_v56, %v1776_v15  ;;  %v623_v50 = vsel %vm612_vm1, %v617_v5, %v618_v9 }
  0x95   : >> { %559 = vrot.lane.b32.xlu1 %v1781_v21, %s1294_s24  ;;  %v494_v37 = vsel %vm490_vm0, %v489_v34, %v486_v32  ;;  %v616_v8 = vsel %vm612_vm1, %v611_v47, %v608_v43  ;;  %v614_v32 = vsel %vm612_vm1, %v609_v45, %v610_v1  ;;  %v626_v43 = vsub.f32 %v1787_v24, %v615_v6 }
  0x96   : >> { %v503_v52 = vsub.f32 %v1781_v21, %v494_v37  ;;  %v625_v37 = vsub.f32 %v1781_v21, %v616_v8  ;;  %v624_v36 = vsel %vm612_vm1, %v620_v12, %v617_v5  ;;  %v505_v45 = vsub.f32 %v1784_v22, %v492_v16 }
  0x97   : >> { %v508_v56 = vand.u32 2147483647, %v504_v14  ;;  %v512_v8 = vmul.f32 %v501_v26, %v1768_v4  ;;  %v613_v0 = vsel %vm612_vm1, %v610_v1, %v611_v47  ;;  %v627_v63 = vsub.f32 %v1784_v22, %v614_v32 }
  0x98   : >> { %561 = vrot.lane.b32.xlu0 %v1787_v24, %s1294_s24  ;;  %v507_v17 = vand.u32 2147483647, %v503_v52  ;;  %v491_v52 = vsel %vm490_vm0, %v488_v49, %v489_v34  ;;  %v629_v61 = vand.u32 2147483647, %v625_v37  ;;  %v630_v62 = vand.u32 2147483647, %v626_v43 }
  0x99   : >> { %443 = vrot.lane.b32.xlu1 %v1798_v30, %s1293_s22  ;;  %v633_v5 = vmul.f32 %v624_v36, %v1776_v15  ;;  %v634_v34 = vmul.f32 %v623_v50, %v1768_v4  ;;  %v536_v49 = vadd.f32 %v1768_v4, %v1776_v15  ;;  %v658_v54 = vmul.f32 %v1776_v15, %v2133_v19 }
  0x9a   : >> { %v515_v6 = vmul.f32 %v511_v18, %v507_v17  ;;  %v659_v14 = vmul.f32 %v1768_v4, %v2132_v20  ;;  %v622_v47 = vsel %vm612_vm1, %v618_v9, %v619_v3  ;;  %v499_v1 = vsel %vm490_vm0, %v497_v13, %v498_v41 }
  0x9b   : >> { %v506_v16 = vsub.f32 %v1798_v30, %v491_v52  ;;  %v509_v17 = vand.u32 2147483647, %v505_v45  ;;  %v513_v18 = vmul.f32 %v500_v40, %v1774_v11  ;;  %v516_v26 = vmul.f32 %v512_v8, %v508_v56 }
  0x9c   : >> { %449 = vrot.lane.b32.xlu0 %v1774_v11, %s1293_s22  ;;  %v519_v32 = vmul.f32 %v515_v6, %v2134_v10  ;;  %v621_v37 = vsel %vm612_vm1, %v619_v3, %v620_v12  ;;  %v628_v43 = vsub.f32 %v1798_v30, %v613_v0  ;;  %v631_v50 = vand.u32 2147483647, %v627_v63 }
  0x9d   : >> { %563 = vrot.lane.b32.xlu1 %v1784_v22, %s1294_s24  ;;  %v635_v36 = vmul.f32 %v622_v47, %v1774_v11  ;;  %v637_v9 = vmul.f32 %v633_v5, %v629_v61  ;;  %v638_v19 = vmul.f32 %v634_v34, %v630_v62  ;;  %v537_v41 = vadd.f32 %v536_v49, %v1774_v11 }
  0x9e   : >> { %v660_v13 = vmul.f32 %v1774_v11, %v2131_v23  ;;  %v662_v52 = vadd.f32 %v659_v14, %v658_v54  ;;  %v510_v40 = vand.u32 2147483647, %v506_v16  ;;  %v514_v45 = vmul.f32 %v499_v1, %v1793_v28 }
  0x9f   : >> { %v517_v56 = vmul.f32 %v513_v18, %v509_v17  ;;  %v523_v8 = vadd.f32 %v519_v32, %v516_v26  ;;  %v632_v6 = vand.u32 2147483647, %v628_v43  ;;  %v636_v3 = vmul.f32 %v621_v37, %v1793_v28 }
  0xa0   : >> { %567 = vrot.lane.b32.xlu0 %v1776_v15, %s1294_s24  ;;  %v639_v0 = vmul.f32 %v635_v36, %v631_v50  ;;  %v641_v63 = vmul.f32 %v637_v9, %v1624_v35  ;;  %v642_v61 = vmul.f32 %v638_v19, %v2132_v20  ;;  %v538_v62 = vadd.f32 %v537_v41, %v1793_v28 }
  0xa1   : >> { %569 = vrot.lane.b32.xlu1 %v1768_v4, %s1294_s24  ;;  %v661_v12 = vmul.f32 %v1793_v28, %v2130_v25  ;;  %v663_v5 = vadd.f32 %v662_v52, %v660_v13  ;;  %v518_v34 = vmul.f32 %v514_v45, %v510_v40  ;;  %v524_v49 = vadd.f32 %v523_v8, %v517_v56 }
  0xa2   : >> { %v640_v54 = vmul.f32 %v636_v3, %v632_v6  ;;  %v643_v14 = vmul.f32 %v639_v0, %v2131_v23  ;;  %v645_v47 = vadd.f32 %v642_v61, %v641_v63  ;;  %v782_v1 = vmul.f32 %v1776_v15, %v1643_v38 }
  0xa3   : >> { %v783_v16 = vmul.f32 %v1768_v4, %v1651_v39  ;;  %v664_v19 = vadd.f32 %v663_v5, %v661_v12  ;;  %v525_v17 = vadd.f32 %v524_v49, %v518_v34  ;;  %v784_v32 = vmul.f32 %v1774_v11, %v1660_v42 }
  0xa4   : >> { %451 = vrot.lane.b32.xlu0 %v1793_v28, %s1293_s22  ;;  %v644_v18 = vmul.f32 %v640_v54, %v2130_v25  ;;  %v646_v26 = vadd.f32 %v645_v47, %v643_v14  ;;  %v785_v50 = vmul.f32 %v1793_v28, %v1664_v44  ;;  %v732_v8 = vrot.slane %v1781_v21, 4 }
  0xa5   : >> { %565 = vrot.lane.b32.xlu1 %v1798_v30, %s1294_s24  ;;  %v786_v37 = vadd.f32 %v783_v16, %v782_v1  ;;  %v733_v6 = vrot.slane %v1787_v24, 4  ;;  %v735_v3 = vrot.slane %v1798_v30, 4  ;;  %v741_v49 = vrot.slane %v1776_v15, 4 }
  0xa6   : >> { %v647_v43 = vadd.f32 %v646_v26, %v644_v18  ;;  %v742_v54 = vrot.slane %v1768_v4, 4  ;;  %v744_v1 = vrot.slane %v1793_v28, 4  ;;  %v743_v18 = vrot.slane %v1774_v11, 4 }
  0xa7   : >> { %v787_v36 = vadd.f32 %v786_v37, %v784_v32  ;;  %v739_v5 = vsel %vm736_vm2, %v732_v8, %v733_v6  ;;  %v740_v34 = vsel %vm736_vm2, %v735_v3, %v732_v8 }
  0xa8   : >> { %571 = vrot.lane.b32.xlu0 %v1774_v11, %s1294_s24 }
  0xa9   : >> { %683 = vrot.lane.b32.xlu1 %v1781_v21, %s1295_s23  ;;  %v788_v9 = vadd.f32 %v787_v36, %v785_v50  ;;  %v750_v50 = vsub.f32 %v1787_v24, %v739_v5 }
  0xac   : >> { %685 = vrot.lane.b32.xlu0 %v1787_v24, %s1295_s23 }
  0xad   : >> { %573 = vrot.lane.b32.xlu1 %v1793_v28, %s1294_s24 }
  0xb0   : >> { %687 = vrot.lane.b32.xlu0 %v1784_v22, %s1295_s23 }
  0xb1   : >> { %691 = vrot.lane.b32.xlu1 %v1776_v15, %s1295_s23 }
  0xb4   : >> { %693 = vrot.lane.b32.xlu0 %v1768_v4, %s1295_s23 }
  0xb5   : >> { %689 = vrot.lane.b32.xlu1 %v1798_v30, %s1295_s23 }
  0xb8   : >> { %695 = vrot.lane.b32.xlu0 %v1774_v11, %s1295_s23 }
  0xb9   : >> { %807 = vrot.lane.b32.xlu1 %v1781_v21, %s1296_s10 }
  0xbc   : >> { %809 = vrot.lane.b32.xlu0 %v1787_v24, %s1296_s10 }
  0xbd   : >> { %697 = vrot.lane.b32.xlu1 %v1793_v28, %s1295_s23 }
  0xc0   : >> { %811 = vrot.lane.b32.xlu0 %v1784_v22, %s1296_s10 }
  0xc1   : >> { %815 = vrot.lane.b32.xlu1 %v1776_v15, %s1296_s10 }
  0xc4   : >> { %817 = vrot.lane.b32.xlu0 %v1768_v4, %s1296_s10 }
  0xc5   : >> { %813 = vrot.lane.b32.xlu1 %v1798_v30, %s1296_s10 }
  0xc8   : >> { %819 = vrot.lane.b32.xlu0 %v1774_v11, %s1296_s10 }
  0xc9   : >> { %821 = vrot.lane.b32.xlu1 %v1793_v28, %s1296_s10 }
  0xe7   : >> { %539 = vadd.xlane.f32.xlu0 %v538_v62  ;;  %v734_v62 = vrot.slane %v1784_v22, 4 }
  0xeb   : >> { %665 = vadd.xlane.f32.xlu0 %v664_v19 }
  0xed   : >> { %526 = vadd.xlane.f32.xlu1 %v525_v17  ;;  %v738_v17 = vsel %vm736_vm2, %v733_v6, %v734_v62 }
  0xee   : >> { %v751_v8 = vsub.f32 %v1784_v22, %v738_v17 }
  0xf1   : >> { %648 = vadd.xlane.f32.xlu1 %v647_v43  ;;  %v749_v43 = vsub.f32 %v1781_v21, %v740_v34 }
  0xf5   : >> { %789 = vadd.xlane.f32.xlu1 %v788_v9  ;;  %v747_v9 = vsel %vm736_vm2, %v741_v49, %v742_v54 }
  0xfd   : >> { %v448_v41 = vpop.permute.xlu0 %447 }
  0xfe   : >> { %v462_v26 = vmul.f32 %v448_v41, %v1768_v4 }
  0xff   : >> { %v446_v13 = vpop.permute.xlu1 %445 }
 0x100   : >> { %v461_v36 = vmul.f32 %v446_v13, %v1776_v15 }
 0x102   : >> { %v438_v52 = vpop.permute.xlu0 %437 }
 0x103   : >> { %v442_v40 = vpop.permute.xlu1 %441  ;;  %v453_v63 = vsub.f32 %v1781_v21, %v438_v52 }
 0x104   : >> { %v455_v14 = vsub.f32 %v1784_v22, %v442_v40 }
 0x105   : >> { %v457_v16 = vand.u32 2147483647, %v453_v63  ;;  %v746_v63 = vsel %vm736_vm2, %v742_v54, %v743_v18 }
 0x106   : >> { %v440_v45 = vpop.permute.xlu0 %439  ;;  %v459_v52 = vand.u32 2147483647, %v455_v14  ;;  %v754_v14 = vand.u32 2147483647, %v750_v50 }
 0x107   : >> { %v560_v56 = vpop.permute.xlu1 %559  ;;  %v454_v0 = vsub.f32 %v1787_v24, %v440_v45  ;;  %v748_v45 = vsel %vm736_vm2, %v744_v1, %v741_v49  ;;  %v465_v41 = vmul.f32 %v461_v36, %v457_v16  ;;  %v758_v16 = vmul.f32 %v747_v9, %v1768_v4 }
 0x108   : >> { %v757_v17 = vmul.f32 %v748_v45, %v1776_v15 }
 0x109   : >> { %v458_v47 = vand.u32 2147483647, %v454_v0  ;;  %v737_v0 = vsel %vm736_vm2, %v734_v62, %v735_v3  ;;  %v745_v3 = vsel %vm736_vm2, %v743_v18, %v744_v1  ;;  %v469_v54 = vmul.f32 %v465_v41, %v1521_v7 }
 0x10a   : >> { %v562_v61 = vpop.permute.xlu0 %561  ;;  %v752_v62 = vsub.f32 %v1798_v30, %v737_v0 }
 0x10b   : >> { %v444_v12 = vpop.permute.xlu1 %443  ;;  %v466_v40 = vmul.f32 %v462_v26, %v458_v47  ;;  %v575_v47 = vsub.f32 %v1781_v21, %v560_v56  ;;  %v576_v49 = vsub.f32 %v1787_v24, %v562_v61  ;;  %v759_v61 = vmul.f32 %v746_v63, %v1774_v11 }
 0x10c   : >> { %v456_v13 = vsub.f32 %v1798_v30, %v444_v12  ;;  %v755_v12 = vand.u32 2147483647, %v751_v8  ;;  %v762_v8 = vmul.f32 %v758_v16, %v754_v14  ;;  %v760_v63 = vmul.f32 %v745_v3, %v1793_v28 }
 0x10d   : >> { %v470_v26 = vmul.f32 %v466_v40, %v1521_v7  ;;  %v579_v18 = vand.u32 2147483647, %v575_v47  ;;  %v580_v40 = vand.u32 2147483647, %v576_v49 }
 0x10e   : >> { %v450_v19 = vpop.permute.xlu0 %449  ;;  %v460_v50 = vand.u32 2147483647, %v456_v13  ;;  %v763_v13 = vmul.f32 %v759_v61, %v755_v12  ;;  %v766_v14 = vmul.f32 %v762_v8, %v1651_v39  ;;  %v865_v8 = vmul.f32 %v1768_v4, %v1776_v15 }
 0x10f   : >> { %v564_v32 = vpop.permute.xlu1 %563  ;;  %v463_v37 = vmul.f32 %v450_v19, %v1774_v11  ;;  %v753_v19 = vand.u32 2147483647, %v749_v43  ;;  %v473_v0 = vadd.f32 %v470_v26, %v469_v54 }
 0x110   : >> { %v577_v36 = vsub.f32 %v1784_v22, %v564_v32  ;;  %v767_v54 = vmul.f32 %v763_v13, %v1660_v42 }
 0x111   : >> { %v467_v5 = vmul.f32 %v463_v37, %v459_v52  ;;  %v761_v45 = vmul.f32 %v757_v17, %v753_v19 }
 0x112   : >> { %v568_v6 = vpop.permute.xlu0 %567  ;;  %v581_v23 = vand.u32 2147483647, %v577_v36 }
 0x113   : >> { %v570_v34 = vpop.permute.xlu1 %569  ;;  %v583_v56 = vmul.f32 %v568_v6, %v1776_v15  ;;  %v471_v9 = vmul.f32 %v467_v5, %v1521_v7  ;;  %v765_v19 = vmul.f32 %v761_v45, %v1710_v55  ;;  %v864_v45 = vmul.f32 %v1793_v28, %v1776_v15 }
 0x114   : >> { %v584_v37 = vmul.f32 %v570_v34, %v1768_v4  ;;  %v756_v34 = vand.u32 2147483647, %v752_v62  ;;  %v856_v62 = vsub.f32 %v1781_v21, %v1798_v30 }
 0x115   : >> { %v587_v6 = vmul.f32 %v583_v56, %v579_v18 }
 0x116   : >> { %v452_v43 = vpop.permute.xlu0 %451  ;;  %v588_v10 = vmul.f32 %v584_v37, %v580_v40  ;;  %v857_v37 = vsub.f32 %v1787_v24, %v1781_v21 }
 0x117   : >> { %v566_v52 = vpop.permute.xlu1 %565  ;;  %v464_v1 = vmul.f32 %v452_v43, %v1793_v28  ;;  %v474_v43 = vadd.f32 %v473_v0, %v471_v9  ;;  %v591_v26 = vmul.f32 %v587_v6, %v1592_v27  ;;  %v858_v9 = vsub.f32 %v1784_v22, %v1787_v24 }
 0x118   : >> { %v578_v47 = vsub.f32 %v1798_v30, %v566_v52  ;;  %v592_v16 = vmul.f32 %v588_v10, %v1599_v29  ;;  %v769_v10 = vadd.f32 %v766_v14, %v765_v19  ;;  %v860_v52 = vand.u32 2147483647, %v856_v62 }
 0x119   : >> { %v468_v41 = vmul.f32 %v464_v1, %v460_v50  ;;  %v861_v40 = vand.u32 2147483647, %v857_v37  ;;  %v866_v19 = vmul.f32 %v1774_v11, %v1768_v4 }
 0x11a   : >> { %v572_v20 = vpop.permute.xlu0 %571  ;;  %v582_v56 = vand.u32 2147483647, %v578_v47  ;;  %v595_v61 = vadd.f32 %v592_v16, %v591_v26  ;;  %v770_v6 = vadd.f32 %v769_v10, %v767_v54  ;;  %v862_v47 = vand.u32 2147483647, %v858_v9 }
 0x11b   : >> { %v472_v32 = vmul.f32 %v468_v41, %v1521_v7  ;;  %v684_v5 = vpop.permute.xlu1 %683  ;;  %v585_v25 = vmul.f32 %v572_v20, %v1774_v11  ;;  %v764_v20 = vmul.f32 %v760_v63, %v756_v34  ;;  %v859_v63 = vsub.f32 %v1798_v30, %v1784_v22 }
 0x11c   : >> { %v699_v13 = vsub.f32 %v1781_v21, %v684_v5  ;;  %v868_v16 = vmul.f32 %v864_v45, %v860_v52  ;;  %v869_v26 = vmul.f32 %v865_v8, %v861_v40 }
 0x11d   : >> { %v589_v49 = vmul.f32 %v585_v25, %v581_v23  ;;  %v475_v17 = vadd.f32 %v474_v43, %v472_v32  ;;  %v768_v18 = vmul.f32 %v764_v20, %v1664_v44  ;;  %v863_v20 = vand.u32 2147483647, %v859_v63 }
 0x11e   : >> { %v686_v3 = vpop.permute.xlu0 %685  ;;  %v703_v5 = vand.u32 2147483647, %v699_v13 }
 0x11f   : >> { %v574_v12 = vpop.permute.xlu1 %573  ;;  %476 = vadd.xlane.f32.xlu0 %v475_v17  ;;  %v593_v23 = vmul.f32 %v589_v49, %v1608_v31  ;;  %v700_v0 = vsub.f32 %v1787_v24, %v686_v3 }
 0x120   : >> { %v586_v25 = vmul.f32 %v574_v12, %v1793_v28  ;;  %v771_v12 = vadd.f32 %v770_v6, %v768_v18 }
 0x121   : >> { %v596_v34 = vadd.f32 %v595_v61, %v593_v23  ;;  %v704_v3 = vand.u32 2147483647, %v700_v0  ;;  %v870_v23 = vmul.f32 %v866_v19, %v862_v47 }
 0x122   : >> { %v590_v50 = vmul.f32 %v586_v25, %v582_v56  ;;  %v688_v36 = vpop.permute.xlu0 %687  ;;  %v867_v56 = vmul.f32 %v1793_v28, %v1774_v11 }
 0x123   : >> { %v692_v1 = vpop.permute.xlu1 %691  ;;  %v701_v14 = vsub.f32 %v1784_v22, %v688_v36  ;;  %v873_v36 = vmul.f32 %v869_v26, %v1733_v58 }
 0x124   : >> { %v594_v41 = vmul.f32 %v590_v50, %v1615_v33  ;;  %v707_v62 = vmul.f32 %v692_v1, %v1776_v15  ;;  %v872_v50 = vmul.f32 0.0, %v868_v16  ;;  %v871_v8 = vmul.f32 %v867_v56, %v863_v20 }
 0x125   : >> { %v705_v25 = vand.u32 2147483647, %v701_v14 }
 0x126   : >> { %v694_v32 = vpop.permute.xlu0 %693  ;;  %v597_v43 = vadd.f32 %v596_v34, %v594_v41  ;;  %v711_v9 = vmul.f32 %v707_v62, %v703_v5  ;;  %v874_v41 = vmul.f32 %v870_v23, %v1740_v59  ;;  %v876_v0 = vadd.f32 %v873_v36, %v872_v50 }
 0x127   : >> { %v690_v49 = vpop.permute.xlu1 %689  ;;  %v708_v17 = vmul.f32 %v694_v32, %v1768_v4  ;;  %v875_v26 = vmul.f32 %v871_v8, %v1743_v60  ;;  %v890_v50 = vmul.f32 %v1768_v4, %v1733_v58 }
 0x128   : >> { %598 = vadd.xlane.f32.xlu0 %v597_v43  ;;  %v702_v52 = vsub.f32 %v1798_v30, %v690_v49  ;;  %v715_v34 = vmul.f32 %v711_v9, %v1674_v46 }
 0x129   : >> { %v712_v54 = vmul.f32 %v708_v17, %v704_v3  ;;  %v877_v3 = vadd.f32 %v876_v0, %v874_v41 }
 0x12a   : >> { %v696_v37 = vpop.permute.xlu0 %695  ;;  %v706_v6 = vand.u32 2147483647, %v702_v52 }
 0x12b   : >> { %v808_v10 = vpop.permute.xlu1 %807  ;;  %v709_v61 = vmul.f32 %v696_v37, %v1774_v11  ;;  %v716_v18 = vmul.f32 %v712_v54, %v1681_v48  ;;  %v878_v23 = vadd.f32 %v877_v3, %v875_v26 }
 0x12c   : >> { %772 = vadd.xlane.f32.xlu0 %v771_v12  ;;  %v823_v19 = vsub.f32 %v1781_v21, %v808_v10 }
 0x12d   : >> { %v713_v1 = vmul.f32 %v709_v61, %v705_v25  ;;  %v719_v32 = vadd.f32 %v716_v18, %v715_v34  ;;  %v889_v61 = vmul.f32 %v1776_v15, %v1725_v57 }
 0x12e   : >> { %v810_v40 = vpop.permute.xlu0 %809  ;;  %v827_v5 = vand.u32 2147483647, %v823_v19 }
 0x12f   : >> { %v698_v45 = vpop.permute.xlu1 %697  ;;  %v717_v63 = vmul.f32 %v713_v1, %v1694_v51  ;;  %v824_v14 = vsub.f32 %v1787_v24, %v810_v40  ;;  %v2135_v1 = vld [vmem:[#allocation17_spill] sm:$0xff]  ;;  %v893_v0 = vadd.f32 %v890_v50, %v889_v61 }
 0x130   : >> { %v710_v13 = vmul.f32 %v698_v45, %v1793_v28  ;;  %v2136_v45 = vld [vmem:[#allocation16_spill] sm:$0xff] }
 0x131   : >> { %v720_v16 = vadd.f32 %v719_v32, %v717_v63  ;;  %v828_v54 = vand.u32 2147483647, %v824_v14 }
 0x132   : >> { %v714_v43 = vmul.f32 %v710_v13, %v706_v6  ;;  %v812_v47 = vpop.permute.xlu0 %811  ;;  %v2137_v6 = vld [vmem:[#allocation18_spill] sm:$0xff]  ;;  %v2138_v13 = vld [vmem:[#allocation19_spill] sm:$0xff] }
 0x133   : >> { %v816_v49 = vpop.permute.xlu1 %815  ;;  %v825_v37 = vsub.f32 %v1784_v22, %v812_v47  ;;  %v892_v47 = vmul.f32 %v1793_v28, %v1743_v60 }
 0x134   : >> { %v718_v17 = vmul.f32 %v714_v43, %v1701_v53  ;;  %v831_v62 = vmul.f32 %v816_v49, %v1776_v15  ;;  %v891_v15 = vmul.f32 %v1774_v11, %v1740_v59 }
 0x135   : >> { %v829_v52 = vand.u32 2147483647, %v825_v37 }
 0x136   : >> { %v818_v12 = vpop.permute.xlu0 %817  ;;  %v721_v20 = vadd.f32 %v720_v16, %v718_v17  ;;  %v835_v25 = vmul.f32 %v831_v62, %v827_v5  ;;  %v894_v19 = vadd.f32 %v893_v0, %v891_v15 }
 0x137   : >> { %v814_v56 = vpop.permute.xlu1 %813  ;;  %v832_v21 = vmul.f32 %v818_v12, %v1768_v4 }
 0x138   : >> { %v826_v24 = vsub.f32 %v1798_v30, %v814_v56  ;;  %722 = vadd.xlane.f32.xlu1 %v721_v20  ;;  %v839_v8 = vmul.f32 %v835_v25, %v2136_v45  ;;  %v895_v49 = vadd.f32 %v894_v19, %v892_v47 }
 0x139   : >> { %v836_v10 = vmul.f32 %v832_v21, %v828_v54 }
 0x13a   : >> { %v830_v36 = vand.u32 2147483647, %v826_v24  ;;  %v820_v9 = vpop.permute.xlu0 %819 }
 0x13b   : >> { %v840_v22 = vmul.f32 %v836_v10, %v2135_v1  ;;  %v822_v18 = vpop.permute.xlu1 %821  ;;  %v833_v40 = vmul.f32 %v820_v9, %v1774_v11 }
 0x13c   : >> { %v834_v30 = vmul.f32 %v822_v18, %v1793_v28  ;;  %879 = vadd.xlane.f32.xlu1 %v878_v23 }
 0x13d   : >> { %v837_v41 = vmul.f32 %v833_v40, %v829_v52  ;;  %v843_v4 = vadd.f32 %v840_v22, %v839_v8 }
 0x13e   : >> { %v838_v34 = vmul.f32 %v834_v30, %v830_v36 }
 0x13f   : >> { %v841_v63 = vmul.f32 %v837_v41, %v2137_v6 }
 0x140   : >> { %v842_v32 = vmul.f32 %v838_v34, %v2138_v13 }
 0x141   : >> { %v844_v43 = vadd.f32 %v843_v4, %v841_v63 }
 0x143   : >> { %v845_v14 = vadd.f32 %v844_v43, %v842_v32 }
 0x145   : >> { %846 = vadd.xlane.f32.xlu0 %v845_v14 }
 0x149   : >> { %896 = vadd.xlane.f32.xlu0 %v895_v49 }
 0x170   : >> { %v540_v16 = vpop.xlane.xlu0 %539 }
 0x171   : >> { %v541_v11 = vrot.slane %v540_v16, 4 }
 0x173   : >> { %v542_v12 = vadd.f32 %v541_v11, %v540_v16 }
 0x174   : >> { %v666_v3 = vpop.xlane.xlu0 %665 }
 0x175   : >> { %v543_v54 = vrot.slane %v542_v12, 2  ;;  %v667_v56 = vrot.slane %v666_v3, 4 }
 0x176   : >> { %v527_v17 = vpop.xlane.xlu1 %526 }
 0x177   : >> { %v528_v26 = vrot.slane %v527_v17, 4  ;;  %v544_v10 = vadd.f32 %v543_v54, %v542_v12  ;;  %v668_v61 = vadd.f32 %v667_v56, %v666_v3 }
 0x179   : >> { %v529_v62 = vadd.f32 %v528_v26, %v527_v17  ;;  %v545_v1 = vrot.slane %v544_v10, 1  ;;  %v669_v22 = vrot.slane %v668_v61, 2 }
 0x17a   : >> { %v649_v20 = vpop.xlane.xlu1 %648 }
 0x17b   : >> { %v530_v5 = vrot.slane %v529_v62, 2  ;;  %v650_v37 = vrot.slane %v649_v20, 4  ;;  %v546_v41 = vadd.f32 %v545_v1, %v544_v10  ;;  %v670_v34 = vadd.f32 %v669_v22, %v668_v61 }
 0x17d   : >> { %v531_v28 = vadd.f32 %v530_v5, %v529_v62  ;;  %v651_v25 = vadd.f32 %v650_v37, %v649_v20  ;;  %v671_v19 = vrot.slane %v670_v34, 1 }
 0x17e   : >> { %v790_v63 = vpop.xlane.xlu1 %789 }
 0x17f   : >> { %v532_v36 = vrot.slane %v531_v28, 1  ;;  %v652_v9 = vrot.slane %v651_v25, 2  ;;  %v791_v43 = vrot.slane %v790_v63, 4  ;;  %v672_v11 = vadd.f32 %v671_v19, %v670_v34 }
 0x181   : >> { %v533_v45 = vadd.f32 %v532_v36, %v531_v28  ;;  %v653_v15 = vadd.f32 %v652_v9, %v651_v25  ;;  %v792_v16 = vadd.f32 %v791_v43, %v790_v63 }
 0x183   : >> { %v654_v13 = vrot.slane %v653_v15, 1  ;;  %v793_v62 = vrot.slane %v792_v16, 2 }
 0x185   : >> { %v655_v49 = vadd.f32 %v654_v13, %v653_v15  ;;  %v794_v37 = vadd.f32 %v793_v62, %v792_v16 }
 0x187   : >> { %v795_v25 = vrot.slane %v794_v37, 1 }
 0x189   : >> { %v796_v9 = vadd.f32 %v795_v25, %v794_v37 }
 0x1a8   : >> { %v477_v21 = vpop.xlane.xlu0 %476 }
 0x1a9   : >> { %v478_v24 = vrot.slane %v477_v21, 4 }
 0x1ab   : >> { %v479_v23 = vadd.f32 %v478_v24, %v477_v21 }
 0x1ad   : >> { %v480_v50 = vrot.slane %v479_v23, 2 }
 0x1af   : >> { %v481_v52 = vadd.f32 %v480_v50, %v479_v23 }
 0x1b1   : >> { %v599_v18 = vpop.xlane.xlu0 %598  ;;  %v482_v40 = vrot.slane %v481_v52, 1 }
 0x1b2   : >> { %v600_v30 = vrot.slane %v599_v18, 4 }
 0x1b3   : >> { %v483_v8 = vadd.f32 %v482_v40, %v481_v52 }
 0x1b4   : >> { %v601_v0 = vadd.f32 %v600_v30, %v599_v18 }
 0x1b5   : >> { %1067 = vpush %v483_v8  ;;  %v773_v4 = vpop.xlane.xlu0 %772 }
 0x1b6   : >> { %v602_v6 = vrot.slane %v601_v0, 2  ;;  %1069 = vpush %v533_v45  ;;  %v774_v32 = vrot.slane %v773_v4, 4 }
 0x1b7   : >> { %1071 = vpush %v546_v41 }
 0x1b8   : >> { %v603_v47 = vadd.f32 %v602_v6, %v601_v0  ;;  %v775_v17 = vadd.f32 %v774_v32, %v773_v4 }
 0x1ba   : >> { %v604_v14 = vrot.slane %v603_v47, 1  ;;  %v776_v3 = vrot.slane %v775_v17, 2 }
 0x1bc   : >> { %v605_v26 = vadd.f32 %v604_v14, %v603_v47  ;;  %v777_v5 = vadd.f32 %v776_v3, %v775_v17  ;;  %v2139_v47 = vld [vmem:[#allocation10_spill] sm:$0xff] }
 0x1bd   : >> { %vm549_vm4 = vcmp.eq.s32.totalorder %v2139_v47, 0  ;;  %vm674_vm7 = vcmp.eq.s32.totalorder %v2139_v47, 1  ;;  %vm798_vm11 = vcmp.eq.s32.totalorder %v2139_v47, 2  ;;  %vm905_vm13 = vcmp.eq.s32.totalorder %v2139_v47, 3 }
 0x1be   : >> { %1073 = vpush %v605_v26  ;;  %v778_v28 = vrot.slane %v777_v5, 1  ;;  %vm550_vm6 = vmand %vm548_vm3, %vm549_vm4 }
 0x1bf   : >> { %1075 = vpush %v655_v49  ;;  %vm555_vm8 = vmand %vm554_vm5, %vm549_vm4 }
 0x1c0   : >> { %1077 = vpush %v672_v11  ;;  %v779_v50 = vadd.f32 %v778_v28, %v777_v5  ;;  %vm675_vm9 = vmand %vm548_vm3, %vm674_vm7 }
 0x1c1   : >> { %v723_v12 = vpop.xlane.xlu1 %722  ;;  %vm679_vm10 = vmand %vm554_vm5, %vm674_vm7 }
 0x1c2   : >> { %v724_v20 = vrot.slane %v723_v12, 4  ;;  %vm799_vm12 = vmand %vm548_vm3, %vm798_vm11 }
 0x1c3   : >> { %vm803_vm14 = vmand %vm554_vm5, %vm798_vm11 }
 0x1c4   : >> { %v725_v54 = vadd.f32 %v724_v20, %v723_v12  ;;  %vm906_vm15 = vmand %vm548_vm3, %vm905_vm13 }
 0x1c5   : >> { %v880_v56 = vpop.xlane.xlu1 %879  ;;  %vm910_vm0 = vmand %vm554_vm5, %vm905_vm13 }
 0x1c6   : >> { %v726_v21 = vrot.slane %v725_v54, 2  ;;  %v881_v24 = vrot.slane %v880_v56, 4 }
 0x1c8   : >> { %v727_v23 = vadd.f32 %v726_v21, %v725_v54  ;;  %v882_v10 = vadd.f32 %v881_v24, %v880_v56 }
 0x1ca   : >> { %v728_v61 = vrot.slane %v727_v23, 1  ;;  %v883_v52 = vrot.slane %v882_v10, 2 }
 0x1cc   : >> { %v729_v36 = vadd.f32 %v728_v61, %v727_v23  ;;  %v884_v40 = vadd.f32 %v883_v52, %v882_v10 }
 0x1ce   : >> { %1079 = vpush %v729_v36  ;;  %v847_v1 = vpop.xlane.xlu0 %846  ;;  %v885_v0 = vrot.slane %v884_v40, 1 }
 0x1cf   : >> { %1081 = vpush %v779_v50  ;;  %v848_v22 = vrot.slane %v847_v1, 4  ;;  %v914_v50 = vld [vmem:[#allocation2] sm:$0xff] }
 0x1d0   : >> { %1083 = vpush %v796_v9  ;;  %v886_v13 = vadd.f32 %v885_v0, %v884_v40 }
 0x1d1   : >> { %v849_v18 = vadd.f32 %v848_v22, %v847_v1 }
 0x1d2   : >> { %v897_v30 = vpop.xlane.xlu0 %896 }
 0x1d3   : >> { %v850_v45 = vrot.slane %v849_v18, 2  ;;  %v898_v8 = vrot.slane %v897_v30, 4 }
 0x1d5   : >> { %v899_v41 = vadd.f32 %v898_v8, %v897_v30  ;;  %v851_v15 = vadd.f32 %v850_v45, %v849_v18 }
 0x1d7   : >> { %v900_v34 = vrot.slane %v899_v41, 2  ;;  %v852_v4 = vrot.slane %v851_v15, 1 }
 0x1d9   : >> { %v901_v6 = vadd.f32 %v900_v34, %v899_v41  ;;  %v853_v63 = vadd.f32 %v852_v4, %v851_v15 }
 0x1db   : >> { %1085 = vpush %v853_v63  ;;  %v902_v32 = vrot.slane %v901_v6, 1 }
 0x1dc   : >> { %1087 = vpush %v886_v13 }
 0x1dd   : >> { %v903_v43 = vadd.f32 %v902_v32, %v901_v6 }
 0x1df   : >> { %1089 = vpush %v903_v43 }
 0x1e6   : >> { %s1068_s12 = spop %1067 }
 0x1e7   : >> { %s1070_s4 = spop %1069 }
 0x1e8   : >> { %s1072_s7 = spop %1071  ;;  %s535_s5 = sadd.f32 %s1070_s4, %s1068_s12 }
 0x1e9   : >> { %v556_v14 = vstv %s1072_s7 }
 0x1ea   : >> { %v551_v19 = vstv %s535_s5  ;;  %v557_v16 = vsel %vm555_vm8, %v556_v14, 0.0 }
 0x1eb   : >> { %v552_v17 = vsel %vm550_vm6, %v551_v19, 0.0 }
 0x1ec   : >> { %v558_v11 = vadd.f32 %v557_v16, %v552_v17 }
 0x1ef   : >> { %s1074_s29 = spop %1073 }
 0x1f0   : >> { %s1076_s25 = spop %1075 }
 0x1f1   : >> { %s657_s30 = sadd.f32 %s1076_s25, %s1074_s29  ;;  %s1078_s21 = spop %1077 }
 0x1f2   : >> { %v680_v3 = vstv %s1078_s21 }
 0x1f3   : >> { %v676_v49 = vstv %s657_s30  ;;  %v681_v20 = vsel %vm679_vm10, %v680_v3, 0.0 }
 0x1f4   : >> { %v677_v26 = vsel %vm675_vm9, %v676_v49, 0.0 }
 0x1f5   : >> { %v678_v62 = vadd.f32 %v677_v26, %v558_v11 }
 0x1f7   : >> { %v682_v54 = vadd.f32 %v681_v20, %v678_v62 }
 0x1ff   : >> { %s1080_s6 = spop %1079 }
 0x200   : >> { %s1082_s27 = spop %1081 }
 0x201   : >> { %s781_s8 = sadd.f32 %s1082_s27, %s1080_s6  ;;  %s1084_s9 = spop %1083 }
 0x202   : >> { %v804_v56 = vstv %s1084_s9 }
 0x203   : >> { %v800_v12 = vstv %s781_s8  ;;  %v805_v21 = vsel %vm803_vm14, %v804_v56, 0.0 }
 0x204   : >> { %v801_v5 = vsel %vm799_vm12, %v800_v12, 0.0 }
 0x205   : >> { %v802_v37 = vadd.f32 %v801_v5, %v682_v54 }
 0x207   : >> { %v806_v24 = vadd.f32 %v805_v21, %v802_v37 }
 0x20c   : >> { %s1086_s11 = spop %1085 }
 0x20d   : >> { %s1088_s22 = spop %1087 }
 0x20e   : >> { %s888_s24 = sadd.f32 %s1088_s22, %s1086_s11 }
 0x210   : >> { %v907_v28 = vstv %s888_s24  ;;  %s1090_s23 = spop %1089 }
 0x211   : >> { %v908_v23 = vsel %vm906_vm15, %v907_v28, 0.0  ;;  %v911_v25 = vstv %s1090_s23 }
 0x212   : >> { %v909_v10 = vadd.f32 %v908_v23, %v806_v24  ;;  %v912_v61 = vsel %vm910_vm0, %v911_v25, 0.0 }
 0x214   : >> { %v913_v36 = vadd.f32 %v912_v61, %v909_v10  ;;  %411 = sbr.rel (!%p409_p4) target bundleno = 136 (0x88), region = 106 }
 0x216   : >> { %v915_v9 = vadd.f32 %v914_v50, %v913_v36 }
 0x218   : >> { %916 = vst [vmem:[#allocation2] sm:$0xff] %v915_v9 }
 0x21f   : > { %v917_v52 = vld [vmem:[#allocation2] sm:$0xff] }
 0x220   : > { %918 = vst [vmem:[%s1518_s15] sm:$0xff] %v917_v52 }
 0x221 PF: > { %p16_p5 = scmp.ge.s32.totalorder %s1339_s17, 4   ;;  %s2140_s12 = smov %s1273_s13 }
 0x222   : > { %s2141_s13 = smov %s1277_s14  ;;  %s2142_s14 = smov %s1349_s20 }
 0x223   : > { %s2143_s15 = smov %s1339_s17  ;;  %18 = sbr.rel (!%p16_p5) target bundleno = 5 (0x5), region = 117 }
 0x228   :  { %938 = vsyncpa [#allocation4], 1 }
 0x229   :  { %940 = vsyncpa [#allocation4 + $0x1], 1 }
 0x22a   :  { %941 = vsyncpa [#allocation6], 1 }
 0x22b   :  { %943 = vsyncpa [#allocation6 + $0x1], 1 }

</bundles_post_ra>
